<compile_context>
chip_gen: v7x
topology: tpu7x:2x2x1
jax: 0.10.0
libtpu: 0.0.40
codegen_flags: <defaults>
</compile_context>

<pallas_src>
import functools

import jax
import jax.numpy as jnp
from jax.experimental import pallas as pl
from jax.experimental.pallas import tpu as pltpu


def _round_up(x, m):
    return ((x + m - 1) // m) * m


def _head_kernel(*refs, num_features):
    # refs layout:
    #   [x_0 ... x_{F-1}]  each (TM, C_f)   flattened pixels per feature slab
    #   [w1_0 ... w1_{F-1}] each (C_f, C)   fuse weight slice per feature
    #   w2_ref (C, NC_pad)                  predict weight with BN folded in
    #   b2_ref (1, NC_pad)                  predict bias with BN folded in
    #   out_ref (TM, NC_pad)
    x_refs = refs[:num_features]
    w1_refs = refs[num_features:2 * num_features]
    w2_ref, b2_ref, out_ref = refs[2 * num_features:]

    # fuse: 1x1 conv over the (virtually) concatenated channels, accumulated
    # per feature slab so the concat is never materialized in HBM.
    h = jnp.dot(x_refs[0][...], w1_refs[0][...],
                preferred_element_type=jnp.float32)
    for f in range(1, num_features):
        h = h + jnp.dot(x_refs[f][...], w1_refs[f][...],
                        preferred_element_type=jnp.float32)

    # ReLU in f32 on the VPU (only MXU inputs are bf16).
    h = jnp.maximum(h, 0.0)

    # predict: eval-mode BN is pre-folded into w2/b2.
    y = jnp.dot(h.astype(w2_ref.dtype), w2_ref[...],
                preferred_element_type=jnp.float32)
    y = y + b2_ref[...]

    out_ref[...] = y.astype(out_ref.dtype)


def segformer_head_forward(features, params, *, tile_m=1024,
                           compute_dtype=jnp.bfloat16):
    """features: list of NCHW arrays [N, C_f, H, W]; returns [N, num_classes, H, W]."""
    num_features = len(features)
    N, _, H, W = features[0].shape
    M = N * H * W

    w1 = params["fuse_w"]          # [C, Cin]  (Conv2d weight squeezed from [C,Cin,1,1])
    gamma = params["bn_gamma"]     # [C]
    beta = params["bn_beta"]       # [C]
    mean = params["bn_mean"]       # [C]
    var = params["bn_var"]         # [C]
    eps = params["bn_eps"]
    w2 = params["pred_w"]          # [NC, C]
    b2 = params["pred_b"]          # [NC]

    C = w1.shape[0]
    NC = w2.shape[0]
    NC_pad = _round_up(max(NC, 128), 128)

    # Per-feature NHWC flatten -> [M, C_f]; cast MXU operands to bf16.
    feat_channels = [int(f.shape[1]) for f in features]
    x_slabs = [
        jnp.transpose(f, (0, 2, 3, 1)).reshape(M, cf).astype(compute_dtype)
        for f, cf in zip(features, feat_channels)
    ]

    # Split the fuse weight to match the (virtual) concat order.
    w1_t = jnp.transpose(w1).astype(jnp.float32)                    # [Cin, C]
    w1_slabs = []
    off = 0
    for cf in feat_channels:
        w1_slabs.append(w1_t[off:off + cf, :].astype(compute_dtype))
        off += cf

    # Fold eval-mode BN into the predict conv (exact since BN follows the ReLU):
    #   y = (ReLU(h)*scale + shift) @ w2_t + b2
    #     = ReLU(h) @ (scale[:,None]*w2_t) + (shift @ w2_t + b2)
    scale = (gamma / jnp.sqrt(var + eps)).astype(jnp.float32)       # [C]
    shift = (beta - mean * scale).astype(jnp.float32)               # [C]
    w2_t = jnp.transpose(w2).astype(jnp.float32)                    # [C, NC]
    w2_f = scale[:, None] * w2_t                                    # [C, NC]
    b2_f = shift @ w2_t + b2.astype(jnp.float32)                    # [NC]

    # Pad classes to a lane-dense multiple of 128 (unmasked stores, full MXU N).
    w2_f = jnp.pad(w2_f, ((0, 0), (0, NC_pad - NC))).astype(compute_dtype)
    b2_f = jnp.pad(b2_f, (0, NC_pad - NC)).reshape(1, NC_pad).astype(jnp.float32)

    # Row tiling: large tiles amortize per-step overhead; cap at M (rounded to
    # a sublane multiple).  No explicit padding of the rows — Pallas handles
    # the ragged last block and drops out-of-bounds writes.
    tile_m = min(tile_m, _round_up(M, 8))
    grid = (pl.cdiv(M, tile_m),)

    # VMEM budget: double-buffered x / output streams + resident weights,
    # 2x headroom, capped at 64 MiB so the same tiling fits v7x.
    itemsize = jnp.dtype(compute_dtype).itemsize
    vmem_needed = (
        2 * tile_m * sum(feat_channels) * itemsize                  # x streams
        + 2 * tile_m * NC_pad * 4                                   # out stream (f32)
        + 2 * (sum(feat_channels) * C + C * NC_pad) * itemsize      # weights
        + 2 * NC_pad * 4                                            # bias
    )
    vmem_limit = int(min(64 * 1024 * 1024,
                         max(32 * 1024 * 1024, 2 * vmem_needed)))

    in_specs = (
        [pl.BlockSpec((tile_m, cf), lambda i: (i, 0)) for cf in feat_channels]
        + [pl.BlockSpec((cf, C), lambda i: (0, 0)) for cf in feat_channels]
        + [pl.BlockSpec((C, NC_pad), lambda i: (0, 0)),
           pl.BlockSpec((1, NC_pad), lambda i: (0, 0))]
    )

    out_flat = pl.pallas_call(
        functools.partial(_head_kernel, num_features=num_features),
        out_shape=jax.ShapeDtypeStruct((M, NC_pad), jnp.float32),
        grid_spec=pltpu.PrefetchScalarGridSpec(
            num_scalar_prefetch=0,
            grid=grid,
            in_specs=in_specs,
            out_specs=pl.BlockSpec((tile_m, NC_pad), lambda i: (i, 0)),
        ),
        compiler_params=pltpu.CompilerParams(
            dimension_semantics=("parallel",),
            vmem_limit_bytes=vmem_limit),
    )(*x_slabs, *w1_slabs, w2_f, b2_f)

    # Drop class padding, back to NCHW.
    out = out_flat[:, :NC].reshape(N, H, W, NC).transpose(0, 3, 1, 2)
    return out


def _reference_forward(features, params):
    """Pure-JAX f32 reference (same eval-mode BN semantics as PyTorch)."""
    x = jnp.concatenate(features, axis=1)                   # [N, Cin, H, W]
    x = jnp.transpose(x, (0, 2, 3, 1))                      # NHWC
    h = jnp.einsum("nhwc,oc->nhwo", x, params["fuse_w"])
    h = jnp.maximum(h, 0.0)
    scale = params["bn_gamma"] / jnp.sqrt(params["bn_var"] + params["bn_eps"])
    shift = params["bn_beta"] - params["bn_mean"] * scale
    h = h * scale + shift
    y = jnp.einsum("nhwc,oc->nhwo", h, params["pred_w"]) + params["pred_b"]
    return jnp.transpose(y, (0, 3, 1, 2))                   # NCHW


if __name__ == "__main__":
    # Small deterministic config.
    batch, channels, num_features, num_classes = 2, 8, 4, 4
    H = W = 16
    cin = channels * num_features

    key = jax.random.PRNGKey(0)
    keys = jax.random.split(key, num_features + 6)

    # num_features input feature maps, each [N, channels, H, W] (NCHW).
    features = [
        jax.random.normal(keys[i], (batch, channels, H, W), dtype=jnp.float32)
        for i in range(num_features)
    ]

    params = {
        "fuse_w": 0.1 * jax.random.normal(keys[num_features + 0],
                                          (channels, cin), dtype=jnp.float32),
        "bn_gamma": jnp.ones((channels,), jnp.float32)
                    + 0.05 * jax.random.normal(keys[num_features + 1], (channels,)),
        "bn_beta": 0.05 * jax.random.normal(keys[num_features + 2], (channels,)),
        "bn_mean": 0.1 * jax.random.normal(keys[num_features + 3], (channels,)),
        "bn_var": jnp.abs(jax.random.normal(keys[num_features + 4], (channels,))) + 0.5,
        "bn_eps": jnp.float32(1e-5),
        "pred_w": 0.1 * jax.random.normal(keys[num_features + 5],
                                          (num_classes, channels), dtype=jnp.float32),
        "pred_b": jnp.linspace(-0.1, 0.1, num_classes, dtype=jnp.float32),
    }

    out = segformer_head_forward(features, params)
    out = jax.block_until_ready(out)

    ref = _reference_forward(features, params)
    assert out.shape == (batch, num_classes, H, W), out.shape
    # Tolerance loosened for the bf16 MXU inputs (f32 accumulation).
    max_err = float(jnp.max(jnp.abs(out - ref)))
    assert max_err < 5e-2, f"mismatch vs reference: max abs err {max_err}"

    print("KERNEL_OK")
</pallas_src>

<mosaic_0001>
module attributes {stable_mosaic.version = 11 : i64} {
  func.func @_head_kernel(%arg0: i32, %arg1: memref<512x8xbf16, #tpu.memory_space<vmem>>, %arg2: memref<512x8xbf16, #tpu.memory_space<vmem>>, %arg3: memref<512x8xbf16, #tpu.memory_space<vmem>>, %arg4: memref<512x8xbf16, #tpu.memory_space<vmem>>, %arg5: memref<8x8xbf16, #tpu.memory_space<vmem>>, %arg6: memref<8x8xbf16, #tpu.memory_space<vmem>>, %arg7: memref<8x8xbf16, #tpu.memory_space<vmem>>, %arg8: memref<8x8xbf16, #tpu.memory_space<vmem>>, %arg9: memref<8x128xbf16, #tpu.memory_space<vmem>>, %arg10: memref<1x128xf32, #tpu.memory_space<vmem>>, %arg11: memref<512x128xf32, #tpu.memory_space<vmem>>) attributes {dimension_semantics = [#tpu.dimension_semantics<parallel>], iteration_bounds = array<i64: 1>, scalar_prefetch = 0 : i64, scratch_operands = 0 : i64, tpu.core_type = #tpu.core_type<tc>, window_params = [{transform_indices = @transform_0, window_bounds = array<i64: 512, 8>}, {transform_indices = @transform_1, window_bounds = array<i64: 512, 8>}, {transform_indices = @transform_2, window_bounds = array<i64: 512, 8>}, {transform_indices = @transform_3, window_bounds = array<i64: 512, 8>}, {pipeline_mode = #tpu.pipeline_mode<synchronous>, transform_indices = @transform_4, window_bounds = array<i64: 8, 8>}, {pipeline_mode = #tpu.pipeline_mode<synchronous>, transform_indices = @transform_5, window_bounds = array<i64: 8, 8>}, {pipeline_mode = #tpu.pipeline_mode<synchronous>, transform_indices = @transform_6, window_bounds = array<i64: 8, 8>}, {pipeline_mode = #tpu.pipeline_mode<synchronous>, transform_indices = @transform_7, window_bounds = array<i64: 8, 8>}, {pipeline_mode = #tpu.pipeline_mode<synchronous>, transform_indices = @transform_8, window_bounds = array<i64: 8, 128>}, {pipeline_mode = #tpu.pipeline_mode<synchronous>, transform_indices = @transform_9, window_bounds = array<i64: 1, 128>}, {transform_indices = @transform_10, window_bounds = array<i64: 512, 128>}]} {
    %c0 = arith.constant 0 : index
    %c0_0 = arith.constant 0 : index
    %0 = vector.load %arg1[%c0, %c0_0] : memref<512x8xbf16, #tpu.memory_space<vmem>>, vector<512x8xbf16>
    %c0_1 = arith.constant 0 : index
    %c0_2 = arith.constant 0 : index
    %1 = vector.load %arg5[%c0_1, %c0_2] : memref<8x8xbf16, #tpu.memory_space<vmem>>, vector<8x8xbf16>
    %cst = arith.constant dense<0.000000e+00> : vector<512x8xf32>
    %2 = tpu.matmul %0, %1, %cst {dimension_numbers = #tpu.dot_dimension_numbers<[1], [0], [0], [1], [0, 0, 1, 1], [], []>} : vector<512x8xbf16>, vector<8x8xbf16>, vector<512x8xf32> -> vector<512x8xf32>
    %c0_3 = arith.constant 0 : index
    %c0_4 = arith.constant 0 : index
    %3 = vector.load %arg2[%c0_3, %c0_4] : memref<512x8xbf16, #tpu.memory_space<vmem>>, vector<512x8xbf16>
    %c0_5 = arith.constant 0 : index
    %c0_6 = arith.constant 0 : index
    %4 = vector.load %arg6[%c0_5, %c0_6] : memref<8x8xbf16, #tpu.memory_space<vmem>>, vector<8x8xbf16>
    %cst_7 = arith.constant dense<0.000000e+00> : vector<512x8xf32>
    %5 = tpu.matmul %3, %4, %cst_7 {dimension_numbers = #tpu.dot_dimension_numbers<[1], [0], [0], [1], [0, 0, 1, 1], [], []>} : vector<512x8xbf16>, vector<8x8xbf16>, vector<512x8xf32> -> vector<512x8xf32>
    %6 = arith.addf %2, %5 : vector<512x8xf32>
    %c0_8 = arith.constant 0 : index
    %c0_9 = arith.constant 0 : index
    %7 = vector.load %arg3[%c0_8, %c0_9] : memref<512x8xbf16, #tpu.memory_space<vmem>>, vector<512x8xbf16>
    %c0_10 = arith.constant 0 : index
    %c0_11 = arith.constant 0 : index
    %8 = vector.load %arg7[%c0_10, %c0_11] : memref<8x8xbf16, #tpu.memory_space<vmem>>, vector<8x8xbf16>
    %cst_12 = arith.constant dense<0.000000e+00> : vector<512x8xf32>
    %9 = tpu.matmul %7, %8, %cst_12 {dimension_numbers = #tpu.dot_dimension_numbers<[1], [0], [0], [1], [0, 0, 1, 1], [], []>} : vector<512x8xbf16>, vector<8x8xbf16>, vector<512x8xf32> -> vector<512x8xf32>
    %10 = arith.addf %6, %9 : vector<512x8xf32>
    %c0_13 = arith.constant 0 : index
    %c0_14 = arith.constant 0 : index
    %11 = vector.load %arg4[%c0_13, %c0_14] : memref<512x8xbf16, #tpu.memory_space<vmem>>, vector<512x8xbf16>
    %c0_15 = arith.constant 0 : index
    %c0_16 = arith.constant 0 : index
    %12 = vector.load %arg8[%c0_15, %c0_16] : memref<8x8xbf16, #tpu.memory_space<vmem>>, vector<8x8xbf16>
    %cst_17 = arith.constant dense<0.000000e+00> : vector<512x8xf32>
    %13 = tpu.matmul %11, %12, %cst_17 {dimension_numbers = #tpu.dot_dimension_numbers<[1], [0], [0], [1], [0, 0, 1, 1], [], []>} : vector<512x8xbf16>, vector<8x8xbf16>, vector<512x8xf32> -> vector<512x8xf32>
    %14 = arith.addf %10, %13 : vector<512x8xf32>
    %cst_18 = arith.constant 0.000000e+00 : f32
    %15 = vector.broadcast %cst_18 : f32 to vector<512x8xf32>
    %16 = arith.maximumf %14, %15 : vector<512x8xf32>
    %17 = arith.truncf %16 : vector<512x8xf32> to vector<512x8xbf16>
    %c0_19 = arith.constant 0 : index
    %c0_20 = arith.constant 0 : index
    %18 = vector.load %arg9[%c0_19, %c0_20] : memref<8x128xbf16, #tpu.memory_space<vmem>>, vector<8x128xbf16>
    %cst_21 = arith.constant dense<0.000000e+00> : vector<512x128xf32>
    %19 = tpu.matmul %17, %18, %cst_21 {dimension_numbers = #tpu.dot_dimension_numbers<[1], [0], [0], [1], [0, 0, 1, 1], [], []>} : vector<512x8xbf16>, vector<8x128xbf16>, vector<512x128xf32> -> vector<512x128xf32>
    %c0_22 = arith.constant 0 : index
    %c0_23 = arith.constant 0 : index
    %20 = vector.load %arg10[%c0_22, %c0_23] : memref<1x128xf32, #tpu.memory_space<vmem>>, vector<1x128xf32>
    %21 = vector.broadcast %20 : vector<1x128xf32> to vector<512x128xf32>
    %22 = arith.addf %19, %21 : vector<512x128xf32>
    %c0_24 = arith.constant 0 : index
    %c0_25 = arith.constant 0 : index
    %23 = vector.load %arg11[%c0_24, %c0_25] : memref<512x128xf32, #tpu.memory_space<vmem>>, vector<512x128xf32>
    tpu.vector_store %arg11[%c0_24, %c0_25], %22 {strides = array<i32>} : memref<512x128xf32, #tpu.memory_space<vmem>>, vector<512x128xf32>,
    return
  }
  func.func @transform_0(%arg0: i32) -> (i32, i32) {
    %c0_i32 = arith.constant 0 : i32
    %c0_i32_0 = arith.constant 0 : i32
    return %arg0, %c0_i32 : i32, i32
  }
  func.func @transform_1(%arg0: i32) -> (i32, i32) {
    %c0_i32 = arith.constant 0 : i32
    %c0_i32_0 = arith.constant 0 : i32
    return %arg0, %c0_i32 : i32, i32
  }
  func.func @transform_2(%arg0: i32) -> (i32, i32) {
    %c0_i32 = arith.constant 0 : i32
    %c0_i32_0 = arith.constant 0 : i32
    return %arg0, %c0_i32 : i32, i32
  }
  func.func @transform_3(%arg0: i32) -> (i32, i32) {
    %c0_i32 = arith.constant 0 : i32
    %c0_i32_0 = arith.constant 0 : i32
    return %arg0, %c0_i32 : i32, i32
  }
  func.func @transform_4(%arg0: i32) -> (i32, i32) {
    %c0_i32 = arith.constant 0 : i32
    %c0_i32_0 = arith.constant 0 : i32
    %c0_i32_1 = arith.constant 0 : i32
    return %c0_i32, %c0_i32_0 : i32, i32
  }
  func.func @transform_5(%arg0: i32) -> (i32, i32) {
    %c0_i32 = arith.constant 0 : i32
    %c0_i32_0 = arith.constant 0 : i32
    %c0_i32_1 = arith.constant 0 : i32
    return %c0_i32, %c0_i32_0 : i32, i32
  }
  func.func @transform_6(%arg0: i32) -> (i32, i32) {
    %c0_i32 = arith.constant 0 : i32
    %c0_i32_0 = arith.constant 0 : i32
    %c0_i32_1 = arith.constant 0 : i32
    return %c0_i32, %c0_i32_0 : i32, i32
  }
  func.func @transform_7(%arg0: i32) -> (i32, i32) {
    %c0_i32 = arith.constant 0 : i32
    %c0_i32_0 = arith.constant 0 : i32
    %c0_i32_1 = arith.constant 0 : i32
    return %c0_i32, %c0_i32_0 : i32, i32
  }
  func.func @transform_8(%arg0: i32) -> (i32, i32) {
    %c0_i32 = arith.constant 0 : i32
    %c0_i32_0 = arith.constant 0 : i32
    %c0_i32_1 = arith.constant 0 : i32
    return %c0_i32, %c0_i32_0 : i32, i32
  }
  func.func @transform_9(%arg0: i32) -> (i32, i32) {
    %c0_i32 = arith.constant 0 : i32
    %c0_i32_0 = arith.constant 0 : i32
    %c0_i32_1 = arith.constant 0 : i32
    return %c0_i32, %c0_i32_0 : i32, i32
  }
  func.func @transform_10(%arg0: i32) -> (i32, i32) {
    %c0_i32 = arith.constant 0 : i32
    %c0_i32_0 = arith.constant 0 : i32
    return %arg0, %c0_i32 : i32, i32
  }
}

</mosaic_0001>

<bundles_post_ra>
// kernel: tpu_custom_call.1
= control target key start
LH: loop header
LB: loop body
LE: loop exit
PB: predicated region body
PF: predicated region fallthrough
CT: control target
= control target key end

     0   :  { %vm424_vm0 = vcmask 1043456   ;;  %vm327_vm1 = vcmask 64512   ;;  %s5231_s0 = inlined_call_operand.vmem [shape: bf16[512,8], index: 0, kind: input, shape index: {}]   ;;  %s5232_s1 = inlined_call_operand.vmem [shape: bf16[512,8], index: 1, kind: input, shape index: {}]   ;;  %s5233_s2 = inlined_call_operand.vmem [shape: bf16[512,8], index: 2, kind: input, shape index: {}]   ;;  %s5234_s3 = inlined_call_operand.vmem [shape: bf16[512,8], index: 3, kind: input, shape index: {}]   ;;  %s5235_s4 = inlined_call_operand.vmem [shape: bf16[8,8], index: 4, kind: input, shape index: {}]   ;;  %s5236_s5 = inlined_call_operand.vmem [shape: bf16[8,8], index: 5, kind: input, shape index: {}]   ;;  %s5237_s6 = inlined_call_operand.vmem [shape: bf16[8,8], index: 6, kind: input, shape index: {}]   ;;  %s5238_s7 = inlined_call_operand.vmem [shape: bf16[8,8], index: 7, kind: input, shape index: {}]   ;;  %s5239_s8 = inlined_call_operand.vmem [shape: bf16[8,128], index: 8, kind: input, shape index: {}]   ;;  %s5240_s9 = inlined_call_operand.vmem [shape: f32[1,128], index: 9, kind: input, shape index: {}]   ;;  %s5241_s10 = inlined_call_operand.hbm [shape: f32[512,128], index: 10, kind: output, shape index: {}]  }
   0x1   :  { %v101_v0 = vld [vmem:[%s5235_s4] sm:$0xf]  ;;  %v4179_v3 = vld [vmem:[%s5231_s0 + $0x8] sm:$0xff]   ;;  %v4180_v6 = vld [vmem:[%s5231_s0 + $0x10] sm:$0xff]  }
   0x2   :  { %4170 = vmatprep.subr.msk.bf16.mxu0 %vm424_vm0, %v101_v0  ;;  %v974_v1 = vsel %vm424_vm0, %v101_v0, 0  ;;  %v4178_v2 = vld [vmem:[%s5231_s0] sm:$0xff]   ;;  %v4181_v7 = vld [vmem:[%s5231_s0 + $0x18] sm:$0xff]   ;;  %v4183_v9 = vld [vmem:[%s5231_s0 + $0x28] sm:$0xff]  }
   0x3   :  { %3712 = vmatpush3.bf16.msra.mxu0 %v974_v1  ;;  %v1329_v4 = vld [vmem:[%s5237_s6] sm:$0xf]  ;;  %3713 = vmatprep.mubr.msk.bf16.mxu0 %vm327_vm1, %v4178_v2  ;;  %v4184_v10 = vld [vmem:[%s5231_s0 + $0x30] sm:$0xff]   ;;  %v4195_v14 = vld [vmem:[%s5232_s1 + $0x8] sm:$0xff]  }
   0x4   :  { %4172 = vmatprep.subr.msk.bf16.mxu0 %vm424_vm0, %v1329_v4  ;;  %v1587_v5 = vsel %vm424_vm0, %v1329_v4, 0  ;;  %v4182_v8 = vld [vmem:[%s5231_s0 + $0x20] sm:$0xff]   ;;  %v4198_v16 = vld [vmem:[%s5232_s1 + $0x10] sm:$0xff]   ;;  %v4185_v17 = vld [vmem:[%s5231_s0 + $0x38] sm:$0xff]  }
   0x5   :  { %v166_v11 = vld [vmem:[%s5236_s5] sm:$0xf]  ;;  %v4199_v19 = vld [vmem:[%s5232_s1 + $0x18] sm:$0xff]   ;;  %v4187_v21 = vld [vmem:[%s5231_s0 + $0x48] sm:$0xff]  }
   0x6   :  { %3714 = vmatmul.mubr.msk.bf16.vlgmr.msra.gmra.mrb[0].mxu0 %vm327_vm1, %v4179_v3  ;;  %4169 = vmatprep.subr.msk.bf16.mxu1 %vm424_vm0, %v166_v11  ;;  %v426_v12 = vsel %vm424_vm0, %v166_v11, 0  ;;  %v4194_v13 = vld [vmem:[%s5232_s1] sm:$0xff]   ;;  %v4188_v22 = vld [vmem:[%s5231_s0 + $0x50] sm:$0xff]   ;;  %v4203_v23 = vld [vmem:[%s5232_s1 + $0x28] sm:$0xff]  }
   0x7   :  { %3778 = vmatpush3.bf16.msra.mxu0 %v1587_v5  ;;  %3717 = vmatprep.mubr.msk.bf16.mxu0 %vm327_vm1, %v4180_v6  ;;  %v2006_v15 = vld [vmem:[%s5238_s7] sm:$0xf]  ;;  %v4206_v24 = vld [vmem:[%s5232_s1 + $0x30] sm:$0xff]   ;;  %v4189_v25 = vld [vmem:[%s5231_s0 + $0x58] sm:$0xff]  }
   0x8   :  { %3646 = vmatpush3.bf16.msra.mxu1 %v426_v12  ;;  %3647 = vmatprep.mubr.msk.bf16.mxu1 %vm327_vm1, %v4194_v13  ;;  %v4186_v18 = vld [vmem:[%s5231_s0 + $0x40] sm:$0xff]   ;;  %v4207_v27 = vld [vmem:[%s5232_s1 + $0x38] sm:$0xff]   ;;  %v4191_v29 = vld [vmem:[%s5231_s0 + $0x68] sm:$0xff]   ;;  %v2264_v39 = vsel %vm424_vm0, %v2006_v15, 0 }
   0x9   :  { %4171 = vmatprep.subr.msk.bf16.mxu1 %vm424_vm0, %v101_v0  ;;  %4173 = vmatprep.subr.msk.bf16.mxu0 %vm424_vm0, %v2006_v15  ;;  %v4202_v20 = vld [vmem:[%s5232_s1 + $0x20] sm:$0xff]   ;;  %v4192_v30 = vld [vmem:[%s5231_s0 + $0x70] sm:$0xff]   ;;  %v4211_v31 = vld [vmem:[%s5232_s1 + $0x48] sm:$0xff]  }
   0xa   :  { %v4190_v26 = vld [vmem:[%s5231_s0 + $0x60] sm:$0xff]   ;;  %v4214_v32 = vld [vmem:[%s5232_s1 + $0x50] sm:$0xff]   ;;  %v4193_v33 = vld [vmem:[%s5231_s0 + $0x78] sm:$0xff]  }
   0xb   :  { %3648 = vmatmul.mubr.msk.bf16.vlgmr.msra.gmra.mrb[0].mxu1 %vm327_vm1, %v4195_v14  ;;  %v4210_v28 = vld [vmem:[%s5232_s1 + $0x40] sm:$0xff]   ;;  %v4215_v35 = vld [vmem:[%s5232_s1 + $0x58] sm:$0xff]   ;;  %v4197_v37 = vld [vmem:[%s5233_s2 + $0x8] sm:$0xff]  }
   0xc   :  { %3976 = vmatpush3.bf16.msra.mxu1 %v974_v1  ;;  %3651 = vmatprep.mubr.msk.bf16.mxu1 %vm327_vm1, %v4198_v16  ;;  %v4196_v34 = vld [vmem:[%s5233_s2] sm:$0xff]   ;;  %v4200_v38 = vld [vmem:[%s5233_s2 + $0x10] sm:$0xff]   ;;  %v4219_v40 = vld [vmem:[%s5232_s1 + $0x68] sm:$0xff]  }
   0xd   :  { %v4218_v36 = vld [vmem:[%s5232_s1 + $0x60] sm:$0xff]   ;;  %v4222_v41 = vld [vmem:[%s5232_s1 + $0x70] sm:$0xff]   ;;  %v4201_v42 = vld [vmem:[%s5233_s2 + $0x18] sm:$0xff]  }
   0xe   :  { %3718 = vmatmul.mubr.msk.bf16.gmra.mrb[4].mxu0 %vm327_vm1, %v4181_v7  ;;  %v4204_v43 = vld [vmem:[%s5233_s2 + $0x20] sm:$0xff]   ;;  %v4223_v44 = vld [vmem:[%s5232_s1 + $0x78] sm:$0xff]   ;;  %v4205_v46 = vld [vmem:[%s5233_s2 + $0x28] sm:$0xff]  }
   0xf   :  { %3721 = vmatprep.mubr.msk.bf16.mxu0 %vm327_vm1, %v4182_v8  ;;  %v4226_v45 = vld [vmem:[%s5232_s1 + $0x80] sm:$0xff]   ;;  %v4208_v47 = vld [vmem:[%s5233_s2 + $0x30] sm:$0xff]   ;;  %v4227_v48 = vld [vmem:[%s5232_s1 + $0x88] sm:$0xff]  }
  0x10   :  { %v4230_v49 = vld [vmem:[%s5232_s1 + $0x90] sm:$0xff]   ;;  %v4209_v50 = vld [vmem:[%s5233_s2 + $0x38] sm:$0xff]   ;;  %v4212_v51 = vld [vmem:[%s5233_s2 + $0x40] sm:$0xff]  }
  0x11   :  { %v4231_v52 = vld [vmem:[%s5232_s1 + $0x98] sm:$0xff]   ;;  %v4234_v53 = vld [vmem:[%s5232_s1 + $0xa0] sm:$0xff]   ;;  %v4213_v54 = vld [vmem:[%s5233_s2 + $0x48] sm:$0xff]  }
  0x12   :  { %v4216_v55 = vld [vmem:[%s5233_s2 + $0x50] sm:$0xff]   ;;  %v4235_v56 = vld [vmem:[%s5232_s1 + $0xa8] sm:$0xff]   ;;  %v4217_v58 = vld [vmem:[%s5233_s2 + $0x58] sm:$0xff]  }
  0x13   :  { %3652 = vmatmul.mubr.msk.bf16.gmra.mrb[4].mxu1 %vm327_vm1, %v4199_v19  ;;  %v4238_v57 = vld [vmem:[%s5232_s1 + $0xb0] sm:$0xff]   ;;  %v4220_v59 = vld [vmem:[%s5233_s2 + $0x60] sm:$0xff]   ;;  %v4239_v60 = vld [vmem:[%s5232_s1 + $0xb8] sm:$0xff]  }
  0x14   :  { %3655 = vmatprep.mubr.msk.bf16.mxu1 %vm327_vm1, %v4202_v20  ;;  %v4242_v61 = vld [vmem:[%s5232_s1 + $0xc0] sm:$0xff]   ;;  %v4221_v62 = vld [vmem:[%s5233_s2 + $0x68] sm:$0xff]   ;;  %v4224_v63 = vld [vmem:[%s5233_s2 + $0x70] sm:$0xff]  }
  0x15   :  { %v4243_v0 = vld [vmem:[%s5232_s1 + $0xc8] sm:$0xff]   ;;  %v4246_v1 = vld [vmem:[%s5232_s1 + $0xd0] sm:$0xff]   ;;  %v4225_v2 = vld [vmem:[%s5233_s2 + $0x78] sm:$0xff]  }
  0x16   :  { %3722 = vmatmul.mubr.msk.bf16.gmra.mrb[8].mxu0 %vm327_vm1, %v4183_v9  ;;  %v4228_v3 = vld [vmem:[%s5233_s2 + $0x80] sm:$0xff]   ;;  %v4247_v4 = vld [vmem:[%s5232_s1 + $0xd8] sm:$0xff]  }
  0x17   :  { %3725 = vmatprep.mubr.msk.bf16.mxu0 %vm327_vm1, %v4184_v10  ;;  %v4250_v5 = vld [vmem:[%s5232_s1 + $0xe0] sm:$0xff]  }
  0x1b   :  { %3656 = vmatmul.mubr.msk.bf16.gmra.mrb[8].mxu1 %vm327_vm1, %v4203_v23 }
  0x1c   :  { %3659 = vmatprep.mubr.msk.bf16.mxu1 %vm327_vm1, %v4206_v24 }
  0x1e   :  { %3726 = vmatmul.mubr.msk.bf16.gmra.mrb[12].mxu0 %vm327_vm1, %v4185_v17 }
  0x1f   :  { %3729 = vmatprep.mubr.msk.bf16.mxu0 %vm327_vm1, %v4186_v18 }
  0x23   :  { %3660 = vmatmul.mubr.msk.bf16.gmra.mrb[12].mxu1 %vm327_vm1, %v4207_v27 }
  0x24   :  { %3663 = vmatprep.mubr.msk.bf16.mxu1 %vm327_vm1, %v4210_v28 }
  0x26   :  { %3730 = vmatmul.mubr.msk.bf16.gmra.mrb[16].mxu0 %vm327_vm1, %v4187_v21 }
  0x27   :  { %3733 = vmatprep.mubr.msk.bf16.mxu0 %vm327_vm1, %v4188_v22 }
  0x2b   :  { %3664 = vmatmul.mubr.msk.bf16.gmra.mrb[16].mxu1 %vm327_vm1, %v4211_v31 }
  0x2c   :  { %3667 = vmatprep.mubr.msk.bf16.mxu1 %vm327_vm1, %v4214_v32 }
  0x2e   :  { %3734 = vmatmul.mubr.msk.bf16.gmra.mrb[20].mxu0 %vm327_vm1, %v4189_v25 }
  0x2f   :  { %3737 = vmatprep.mubr.msk.bf16.mxu0 %vm327_vm1, %v4190_v26 }
  0x33   :  { %3668 = vmatmul.mubr.msk.bf16.gmra.mrb[20].mxu1 %vm327_vm1, %v4215_v35 }
  0x34   :  { %3671 = vmatprep.mubr.msk.bf16.mxu1 %vm327_vm1, %v4218_v36 }
  0x36   :  { %3738 = vmatmul.mubr.msk.bf16.gmra.mrb[24].mxu0 %vm327_vm1, %v4191_v29 }
  0x37   :  { %3741 = vmatprep.mubr.msk.bf16.mxu0 %vm327_vm1, %v4192_v30 }
  0x3b   :  { %3672 = vmatmul.mubr.msk.bf16.gmra.mrb[24].mxu1 %vm327_vm1, %v4219_v40 }
  0x3c   :  { %3675 = vmatprep.mubr.msk.bf16.mxu1 %vm327_vm1, %v4222_v41 }
  0x3e   :  { %3742 = vmatmul.mubr.msk.bf16.gmra.mrb[28].mxu0 %vm327_vm1, %v4193_v33 }
  0x3f   :  { %3779 = vmatprep.mubr.msk.bf16.mxu0 %vm327_vm1, %v4196_v34 }
  0x43   :  { %3676 = vmatmul.mubr.msk.bf16.gmra.mrb[28].mxu1 %vm327_vm1, %v4223_v44 }
  0x44   :  { %3679 = vmatprep.mubr.msk.bf16.mxu1 %vm327_vm1, %v4226_v45 }
  0x46   :  { %3780 = vmatmul.mubr.msk.bf16.vlgmr.msra.gmra.mrb[0].mxu0 %vm327_vm1, %v4197_v37 }
  0x47   :  { %3844 = vmatpush3.bf16.msra.mxu0 %v2264_v39  ;;  %3783 = vmatprep.mubr.msk.bf16.mxu0 %vm327_vm1, %v4200_v38 }
  0x4b   :  { %3680 = vmatmul.mubr.msk.bf16.gmra.mrb[32].mxu1 %vm327_vm1, %v4227_v48 }
  0x4c   :  { %3683 = vmatprep.mubr.msk.bf16.mxu1 %vm327_vm1, %v4230_v49 }
  0x4e   :  { %3784 = vmatmul.mubr.msk.bf16.gmra.mrb[4].mxu0 %vm327_vm1, %v4201_v42 }
  0x4f   :  { %3787 = vmatprep.mubr.msk.bf16.mxu0 %vm327_vm1, %v4204_v43 }
  0x53   :  { %3684 = vmatmul.mubr.msk.bf16.gmra.mrb[36].mxu1 %vm327_vm1, %v4231_v52 }
  0x54   :  { %3687 = vmatprep.mubr.msk.bf16.mxu1 %vm327_vm1, %v4234_v53 }
  0x56   :  { %3788 = vmatmul.mubr.msk.bf16.gmra.mrb[8].mxu0 %vm327_vm1, %v4205_v46 }
  0x57   :  { %3791 = vmatprep.mubr.msk.bf16.mxu0 %vm327_vm1, %v4208_v47 }
  0x5b   :  { %3688 = vmatmul.mubr.msk.bf16.gmra.mrb[40].mxu1 %vm327_vm1, %v4235_v56 }
  0x5c   :  { %3691 = vmatprep.mubr.msk.bf16.mxu1 %vm327_vm1, %v4238_v57 }
  0x5e   :  { %3792 = vmatmul.mubr.msk.bf16.gmra.mrb[12].mxu0 %vm327_vm1, %v4209_v50 }
  0x5f   :  { %3795 = vmatprep.mubr.msk.bf16.mxu0 %vm327_vm1, %v4212_v51 }
  0x63   :  { %3692 = vmatmul.mubr.msk.bf16.gmra.mrb[44].mxu1 %vm327_vm1, %v4239_v60 }
  0x64   :  { %3695 = vmatprep.mubr.msk.bf16.mxu1 %vm327_vm1, %v4242_v61 }
  0x66   :  { %3796 = vmatmul.mubr.msk.bf16.gmra.mrb[16].mxu0 %vm327_vm1, %v4213_v54 }
  0x67   :  { %3799 = vmatprep.mubr.msk.bf16.mxu0 %vm327_vm1, %v4216_v55 }
  0x6b   :  { %3696 = vmatmul.mubr.msk.bf16.gmra.mrb[48].mxu1 %vm327_vm1, %v4243_v0 }
  0x6c   :  { %3699 = vmatprep.mubr.msk.bf16.mxu1 %vm327_vm1, %v4246_v1 }
  0x6e   :  { %3800 = vmatmul.mubr.msk.bf16.gmra.mrb[20].mxu0 %vm327_vm1, %v4217_v58 }
  0x6f   :  { %3803 = vmatprep.mubr.msk.bf16.mxu0 %vm327_vm1, %v4220_v59 }
  0x76   :  { %3804 = vmatmul.mubr.msk.bf16.gmra.mrb[24].mxu0 %vm327_vm1, %v4221_v62 }
  0x77   :  { %3807 = vmatprep.mubr.msk.bf16.mxu0 %vm327_vm1, %v4224_v63 }
  0x78   :  { %15 = vsyncpa [#allocation3], 0  ;;  %3700 = vmatmul.mubr.msk.bf16.gmra.mrb[52].mxu1 %vm327_vm1, %v4247_v4  ;;  %v4229_v6 = vld [vmem:[%s5233_s2 + $0x88] sm:$0xff]   ;;  %v4232_v7 = vld [vmem:[%s5233_s2 + $0x90] sm:$0xff]  }
  0x79   :  { %3703 = vmatprep.mubr.msk.bf16.mxu1 %vm327_vm1, %v4250_v5  ;;  %v4251_v8 = vld [vmem:[%s5232_s1 + $0xe8] sm:$0xff]   ;;  %v4254_v9 = vld [vmem:[%s5232_s1 + $0xf0] sm:$0xff]   ;;  %v4233_v10 = vld [vmem:[%s5233_s2 + $0x98] sm:$0xff]  }
  0x7a   :  { %v4236_v11 = vld [vmem:[%s5233_s2 + $0xa0] sm:$0xff]   ;;  %v4255_v12 = vld [vmem:[%s5232_s1 + $0xf8] sm:$0xff]   ;;  %v4237_v14 = vld [vmem:[%s5233_s2 + $0xa8] sm:$0xff]  }
  0x7b   :  { %v4258_v13 = vld [vmem:[%s5231_s0 + $0x80] sm:$0xff]   ;;  %v4240_v15 = vld [vmem:[%s5233_s2 + $0xb0] sm:$0xff]   ;;  %v4259_v16 = vld [vmem:[%s5231_s0 + $0x88] sm:$0xff]  }
  0x7c   :  { %v4262_v17 = vld [vmem:[%s5231_s0 + $0x90] sm:$0xff]   ;;  %v4241_v18 = vld [vmem:[%s5233_s2 + $0xb8] sm:$0xff]   ;;  %v4244_v19 = vld [vmem:[%s5233_s2 + $0xc0] sm:$0xff]  }
  0x7d   :  { %v4263_v20 = vld [vmem:[%s5231_s0 + $0x98] sm:$0xff]   ;;  %v4266_v21 = vld [vmem:[%s5231_s0 + $0xa0] sm:$0xff]   ;;  %v4245_v22 = vld [vmem:[%s5233_s2 + $0xc8] sm:$0xff]  }
  0x7e   :  { %3808 = vmatmul.mubr.msk.bf16.gmra.mrb[28].mxu0 %vm327_vm1, %v4225_v2  ;;  %v4248_v23 = vld [vmem:[%s5233_s2 + $0xd0] sm:$0xff]   ;;  %v4267_v24 = vld [vmem:[%s5231_s0 + $0xa8] sm:$0xff]   ;;  %v4249_v26 = vld [vmem:[%s5233_s2 + $0xd8] sm:$0xff]  }
  0x7f   :  { %3811 = vmatprep.mubr.msk.bf16.mxu0 %vm327_vm1, %v4228_v3  ;;  %v4270_v25 = vld [vmem:[%s5231_s0 + $0xb0] sm:$0xff]   ;;  %v4252_v27 = vld [vmem:[%s5233_s2 + $0xe0] sm:$0xff]   ;;  %v4271_v28 = vld [vmem:[%s5231_s0 + $0xb8] sm:$0xff]  }
  0x80   :  { %3704 = vmatmul.mubr.msk.bf16.gmra.mrb[56].mxu1 %vm327_vm1, %v4251_v8  ;;  %v4274_v29 = vld [vmem:[%s5231_s0 + $0xc0] sm:$0xff]   ;;  %v4253_v30 = vld [vmem:[%s5233_s2 + $0xe8] sm:$0xff]   ;;  %v4256_v31 = vld [vmem:[%s5233_s2 + $0xf0] sm:$0xff]  }
  0x81   :  { %3707 = vmatprep.mubr.msk.bf16.mxu1 %vm327_vm1, %v4254_v9  ;;  %v4275_v32 = vld [vmem:[%s5231_s0 + $0xc8] sm:$0xff]   ;;  %v4278_v33 = vld [vmem:[%s5231_s0 + $0xd0] sm:$0xff]   ;;  %v4257_v34 = vld [vmem:[%s5233_s2 + $0xf8] sm:$0xff]  }
  0x82   :  { %v4260_v35 = vld [vmem:[%s5234_s3] sm:$0xff]   ;;  %v4279_v36 = vld [vmem:[%s5231_s0 + $0xd8] sm:$0xff]   ;;  %v4261_v40 = vld [vmem:[%s5234_s3 + $0x8] sm:$0xff]  }
  0x83   :  { %v4282_v37 = vld [vmem:[%s5231_s0 + $0xe0] sm:$0xff]   ;;  %v4264_v41 = vld [vmem:[%s5234_s3 + $0x10] sm:$0xff]   ;;  %v4283_v42 = vld [vmem:[%s5231_s0 + $0xe8] sm:$0xff]  }
  0x84   :  { %v2715_v38 = vld [vmem:[%s5239_s8] sm:$0xf]  ;;  %v4286_v43 = vld [vmem:[%s5231_s0 + $0xf0] sm:$0xff]   ;;  %v4265_v44 = vld [vmem:[%s5234_s3 + $0x18] sm:$0xff]  }
  0x85   :  { %4174 = vmatprep.subr.msk.bf16.mxu1 %vm424_vm0, %v2715_v38  ;;  %v2820_v39 = vsel %vm424_vm0, %v2715_v38, 0  ;;  %v4268_v45 = vld [vmem:[%s5234_s3 + $0x20] sm:$0xff]   ;;  %v4287_v46 = vld [vmem:[%s5231_s0 + $0xf8] sm:$0xff]   ;;  %v4269_v47 = vld [vmem:[%s5234_s3 + $0x28] sm:$0xff]  }
  0x86   :  { %3812 = vmatmul.mubr.msk.bf16.gmra.mrb[32].mxu0 %vm327_vm1, %v4229_v6  ;;  %v4272_v48 = vld [vmem:[%s5234_s3 + $0x30] sm:$0xff]   ;;  %v4273_v49 = vld [vmem:[%s5234_s3 + $0x38] sm:$0xff]   ;;  %v4276_v50 = vld [vmem:[%s5234_s3 + $0x40] sm:$0xff]  }
  0x87   :  { %3815 = vmatprep.mubr.msk.bf16.mxu0 %vm327_vm1, %v4232_v7  ;;  %v4277_v51 = vld [vmem:[%s5234_s3 + $0x48] sm:$0xff]   ;;  %v4280_v52 = vld [vmem:[%s5234_s3 + $0x50] sm:$0xff]   ;;  %v4281_v53 = vld [vmem:[%s5234_s3 + $0x58] sm:$0xff]  }
  0x88   :  { %3708 = vmatmul.mubr.msk.bf16.gmra.mrb[60].mxu1 %vm327_vm1, %v4255_v12  ;;  %v4284_v55 = vld [vmem:[%s5234_s3 + $0x60] sm:$0xff]   ;;  %v4285_v59 = vld [vmem:[%s5234_s3 + $0x68] sm:$0xff]   ;;  %v4288_v61 = vld [vmem:[%s5234_s3 + $0x70] sm:$0xff]  }
  0x89   :  { %3745 = vmatprep.mubr.msk.bf16.mxu1 %vm327_vm1, %v4258_v13  ;;  %v4289_v1 = vld [vmem:[%s5234_s3 + $0x78] sm:$0xff]   ;;  %v4290_v3 = vld [vmem:[%s5234_s3 + $0x80] sm:$0xff]   ;;  %v4291_v7 = vld [vmem:[%s5234_s3 + $0x88] sm:$0xff]  }
  0x8a   :  { %v4292_v9 = vld [vmem:[%s5234_s3 + $0x90] sm:$0xff]   ;;  %v4293_v13 = vld [vmem:[%s5234_s3 + $0x98] sm:$0xff]   ;;  %v4302_v38 = vld [vmem:[%s5234_s3 + $0xe0] sm:$0xff]  }
  0x8e   :  { %3816 = vmatmul.mubr.msk.bf16.gmra.mrb[36].mxu0 %vm327_vm1, %v4233_v10 }
  0x8f   :  { %3819 = vmatprep.mubr.msk.bf16.mxu0 %vm327_vm1, %v4236_v11 }
  0x90   :  { %3746 = vmatmul.mubr.msk.bf16.vlgmr.msra.gmra.mrb[32].mxu1 %vm327_vm1, %v4259_v16 }
  0x91   :  { %3749 = vmatprep.mubr.msk.bf16.mxu1 %vm327_vm1, %v4262_v17  ;;  %3910 = vmatpush3.bf16.msra.mxu1 %v2820_v39  ;;  %v4303_v39 = vld [vmem:[%s5234_s3 + $0xe8] sm:$0xff]  }
  0x96   :  { %3820 = vmatmul.mubr.msk.bf16.gmra.mrb[40].mxu0 %vm327_vm1, %v4237_v14 }
  0x97   :  { %3823 = vmatprep.mubr.msk.bf16.mxu0 %vm327_vm1, %v4240_v15  ;;  %v4294_v15 = vld [vmem:[%s5234_s3 + $0xa0] sm:$0xff]  }
  0x98   :  { %3750 = vmatmul.mubr.msk.bf16.gmra.mrb[36].mxu1 %vm327_vm1, %v4263_v20 }
  0x99   :  { %3753 = vmatprep.mubr.msk.bf16.mxu1 %vm327_vm1, %v4266_v21  ;;  %v4296_v21 = vld [vmem:[%s5234_s3 + $0xb0] sm:$0xff]  }
  0x9e   :  { %3824 = vmatmul.mubr.msk.bf16.gmra.mrb[44].mxu0 %vm327_vm1, %v4241_v18 }
  0x9f   :  { %3827 = vmatprep.mubr.msk.bf16.mxu0 %vm327_vm1, %v4244_v19  ;;  %v4295_v19 = vld [vmem:[%s5234_s3 + $0xa8] sm:$0xff]  }
  0xa0   :  { %3754 = vmatmul.mubr.msk.bf16.gmra.mrb[40].mxu1 %vm327_vm1, %v4267_v24 }
  0xa1   :  { %3757 = vmatprep.mubr.msk.bf16.mxu1 %vm327_vm1, %v4270_v25  ;;  %v4297_v25 = vld [vmem:[%s5234_s3 + $0xb8] sm:$0xff]  }
  0xa6   :  { %3828 = vmatmul.mubr.msk.bf16.gmra.mrb[48].mxu0 %vm327_vm1, %v4245_v22 }
  0xa7   :  { %3831 = vmatprep.mubr.msk.bf16.mxu0 %vm327_vm1, %v4248_v23 }
  0xa8   :  { %3758 = vmatmul.mubr.msk.bf16.gmra.mrb[44].mxu1 %vm327_vm1, %v4271_v28 }
  0xa9   :  { %3761 = vmatprep.mubr.msk.bf16.mxu1 %vm327_vm1, %v4274_v29 }
  0xae   :  { %3832 = vmatmul.mubr.msk.bf16.gmra.mrb[52].mxu0 %vm327_vm1, %v4249_v26  ;;  %v4298_v26 = vld [vmem:[%s5234_s3 + $0xc0] sm:$0xff]  }
  0xaf   :  { %3835 = vmatprep.mubr.msk.bf16.mxu0 %vm327_vm1, %v4252_v27 }
  0xb0   :  { %3762 = vmatmul.mubr.msk.bf16.gmra.mrb[48].mxu1 %vm327_vm1, %v4275_v32  ;;  %v4300_v32 = vld [vmem:[%s5234_s3 + $0xd0] sm:$0xff]  }
  0xb1   :  { %3765 = vmatprep.mubr.msk.bf16.mxu1 %vm327_vm1, %v4278_v33 }
  0xb6   :  { %3836 = vmatmul.mubr.msk.bf16.gmra.mrb[56].mxu0 %vm327_vm1, %v4253_v30 }
  0xb7   :  { %3839 = vmatprep.mubr.msk.bf16.mxu0 %vm327_vm1, %v4256_v31  ;;  %v4299_v31 = vld [vmem:[%s5234_s3 + $0xc8] sm:$0xff]  }
  0xb8   :  { %3766 = vmatmul.mubr.msk.bf16.gmra.mrb[52].mxu1 %vm327_vm1, %v4279_v36 }
  0xb9   :  { %3769 = vmatprep.mubr.msk.bf16.mxu1 %vm327_vm1, %v4282_v37  ;;  %v4301_v37 = vld [vmem:[%s5234_s3 + $0xd8] sm:$0xff]  }
  0xbe   :  { %3840 = vmatmul.mubr.msk.bf16.gmra.mrb[60].mxu0 %vm327_vm1, %v4257_v34 }
  0xbf   :  { %3845 = vmatprep.mubr.msk.bf16.mxu0 %vm327_vm1, %v4260_v35 }
  0xc0   :  { %3770 = vmatmul.mubr.msk.bf16.gmra.mrb[56].mxu1 %vm327_vm1, %v4283_v42 }
  0xc1   :  { %3773 = vmatprep.mubr.msk.bf16.mxu1 %vm327_vm1, %v4286_v43 }
  0xc6   :  { %3846 = vmatmul.mubr.msk.bf16.vlgmr.msra.gmra.mrb[0].mxu0 %vm327_vm1, %v4261_v40  ;;  %v4304_v40 = vld [vmem:[%s5234_s3 + $0xf0] sm:$0xff]  }
  0xc7   :  { %3849 = vmatprep.mubr.msk.bf16.mxu0 %vm327_vm1, %v4264_v41  ;;  %v4305_v41 = vld [vmem:[%s5234_s3 + $0xf8] sm:$0xff]  }
  0xc8   :  { %3774 = vmatmul.mubr.msk.bf16.gmra.mrb[60].mxu1 %vm327_vm1, %v4287_v46 }
  0xce   :  { %3850 = vmatmul.mubr.msk.bf16.gmra.mrb[4].mxu0 %vm327_vm1, %v4265_v44 }
  0xcf   :  { %3853 = vmatprep.mubr.msk.bf16.mxu0 %vm327_vm1, %v4268_v45 }
  0xd6   :  { %3854 = vmatmul.mubr.msk.bf16.gmra.mrb[8].mxu0 %vm327_vm1, %v4269_v47 }
  0xd7   :  { %3857 = vmatprep.mubr.msk.bf16.mxu0 %vm327_vm1, %v4272_v48 }
  0xde   :  { %3858 = vmatmul.mubr.msk.bf16.gmra.mrb[12].mxu0 %vm327_vm1, %v4273_v49  ;;  %v4845_v54 = vpop.f32.mrb[0].mxu1 }
  0xdf   :  { %3861 = vmatprep.mubr.msk.bf16.mxu0 %vm327_vm1, %v4276_v50  ;;  %v4850_v56 = vpop.f32.mrb[1].mxu1 }
  0xe0   :  { %v4852_v57 = vpop.f32.mrb[2].mxu1 }
  0xe1   :  { %v4854_v58 = vpop.f32.mrb[3].mxu1 }
  0xe6   :  { %3862 = vmatmul.mubr.msk.bf16.gmra.mrb[16].mxu0 %vm327_vm1, %v4277_v51  ;;  %v4861_v60 = vpop.f32.mrb[4].mxu1 }
  0xe7   :  { %3865 = vmatprep.mubr.msk.bf16.mxu0 %vm327_vm1, %v4280_v52  ;;  %v4866_v62 = vpop.f32.mrb[5].mxu1 }
  0xe8   :  { %v4868_v63 = vpop.f32.mrb[6].mxu1 }
  0xe9   :  { %v4870_v0 = vpop.f32.mrb[7].mxu1 }
  0xee   :  { %3866 = vmatmul.mubr.msk.bf16.gmra.mrb[20].mxu0 %vm327_vm1, %v4281_v53  ;;  %v4877_v2 = vpop.f32.mrb[8].mxu1 }
  0xef   :  { %3869 = vmatprep.mubr.msk.bf16.mxu0 %vm327_vm1, %v4284_v55  ;;  %v4882_v4 = vpop.f32.mrb[9].mxu1 }
  0xf0   :  { %v4884_v5 = vpop.f32.mrb[10].mxu1 }
  0xf1   :  { %v4886_v6 = vpop.f32.mrb[11].mxu1 }
  0xf6   :  { %3870 = vmatmul.mubr.msk.bf16.gmra.mrb[24].mxu0 %vm327_vm1, %v4285_v59  ;;  %v4893_v8 = vpop.f32.mrb[12].mxu1 }
  0xf7   :  { %3873 = vmatprep.mubr.msk.bf16.mxu0 %vm327_vm1, %v4288_v61  ;;  %v4898_v10 = vpop.f32.mrb[13].mxu1 }
  0xf8   :  { %v4900_v11 = vpop.f32.mrb[14].mxu1 }
  0xf9   :  { %v4902_v12 = vpop.f32.mrb[15].mxu1 }
  0xfe   :  { %3874 = vmatmul.mubr.msk.bf16.gmra.mrb[28].mxu0 %vm327_vm1, %v4289_v1  ;;  %v4909_v14 = vpop.f32.mrb[16].mxu1 }
  0xff   :  { %3877 = vmatprep.mubr.msk.bf16.mxu0 %vm327_vm1, %v4290_v3  ;;  %v4914_v16 = vpop.f32.mrb[17].mxu1 }
 0x100   :  { %v4916_v17 = vpop.f32.mrb[18].mxu1 }
 0x101   :  { %v4918_v18 = vpop.f32.mrb[19].mxu1 }
 0x106   :  { %3878 = vmatmul.mubr.msk.bf16.gmra.mrb[32].mxu0 %vm327_vm1, %v4291_v7  ;;  %v4925_v20 = vpop.f32.mrb[20].mxu1 }
 0x107   :  { %3881 = vmatprep.mubr.msk.bf16.mxu0 %vm327_vm1, %v4292_v9  ;;  %v4930_v22 = vpop.f32.mrb[21].mxu1 }
 0x108   :  { %v4932_v23 = vpop.f32.mrb[22].mxu1 }
 0x109   :  { %v4934_v24 = vpop.f32.mrb[23].mxu1 }
 0x10e   :  { %3882 = vmatmul.mubr.msk.bf16.gmra.mrb[36].mxu0 %vm327_vm1, %v4293_v13  ;;  %v4944_v27 = vpop.f32.mrb[24].mxu1 }
 0x10f   :  { %3885 = vmatprep.mubr.msk.bf16.mxu0 %vm327_vm1, %v4294_v15  ;;  %v4946_v28 = vpop.f32.mrb[25].mxu1 }
 0x110   :  { %v4948_v29 = vpop.f32.mrb[26].mxu1 }
 0x111   :  { %v4951_v30 = vpop.f32.mrb[27].mxu1 }
 0x116   :  { %3886 = vmatmul.mubr.msk.bf16.gmra.mrb[40].mxu0 %vm327_vm1, %v4295_v19  ;;  %v4960_v33 = vpop.f32.mrb[28].mxu1 }
 0x117   :  { %3889 = vmatprep.mubr.msk.bf16.mxu0 %vm327_vm1, %v4296_v21  ;;  %v4962_v34 = vpop.f32.mrb[29].mxu1 }
 0x118   :  { %v4964_v35 = vpop.f32.mrb[30].mxu1 }
 0x119   :  { %v4967_v36 = vpop.f32.mrb[31].mxu1 }
 0x11e   :  { %3890 = vmatmul.mubr.msk.bf16.gmra.mrb[44].mxu0 %vm327_vm1, %v4297_v25 }
 0x11f   :  { %3893 = vmatprep.mubr.msk.bf16.mxu0 %vm327_vm1, %v4298_v26 }
 0x126   :  { %3894 = vmatmul.mubr.msk.bf16.gmra.mrb[48].mxu0 %vm327_vm1, %v4299_v31 }
 0x127   :  { %3897 = vmatprep.mubr.msk.bf16.mxu0 %vm327_vm1, %v4300_v32 }
 0x12e   :  { %3898 = vmatmul.mubr.msk.bf16.gmra.mrb[52].mxu0 %vm327_vm1, %v4301_v37 }
 0x12f   :  { %3901 = vmatprep.mubr.msk.bf16.mxu0 %vm327_vm1, %v4302_v38 }
 0x136   :  { %3902 = vmatmul.mubr.msk.bf16.gmra.mrb[56].mxu0 %vm327_vm1, %v4303_v39 }
 0x137   :  { %3905 = vmatprep.mubr.msk.bf16.mxu0 %vm327_vm1, %v4304_v40 }
 0x13e   :  { %3906 = vmatmul.mubr.msk.bf16.gmra.mrb[60].mxu0 %vm327_vm1, %v4305_v41 }
 0x163   :  { %v4990_v42 = vpop.f32.mrb[32].mxu1 }
 0x164   :  { %v4992_v43 = vpop.f32.mrb[33].mxu1 }
 0x165   :  { %v4994_v44 = vpop.f32.mrb[34].mxu1 }
 0x166   :  { %v4996_v45 = vpop.f32.mrb[35].mxu1 }
 0x16b   :  { %v4998_v46 = vpop.f32.mrb[36].mxu1 }
 0x16c   :  { %v5000_v47 = vpop.f32.mrb[37].mxu1 }
 0x16d   :  { %v5002_v48 = vpop.f32.mrb[38].mxu1 }
 0x16e   :  { %v5004_v49 = vpop.f32.mrb[39].mxu1 }
 0x173   :  { %v5006_v50 = vpop.f32.mrb[40].mxu1 }
 0x174   :  { %v5008_v51 = vpop.f32.mrb[41].mxu1 }
 0x175   :  { %v5010_v52 = vpop.f32.mrb[42].mxu1 }
 0x176   :  { %v5012_v53 = vpop.f32.mrb[43].mxu1 }
 0x17b   :  { %v5014_v55 = vpop.f32.mrb[44].mxu1 }
 0x17c   :  { %v5016_v59 = vpop.f32.mrb[45].mxu1 }
 0x17d   :  { %v5018_v61 = vpop.f32.mrb[46].mxu1 }
 0x17e   :  { %v5020_v1 = vpop.f32.mrb[47].mxu1 }
 0x183   :  { %v5022_v3 = vpop.f32.mrb[48].mxu1 }
 0x184   :  { %5242 = vst [vmem:[#allocation5_spill] sm:$0xff] %v5022_v3  ;;  %v5024_v7 = vpop.f32.mrb[49].mxu1 }
 0x185   :  { %5243 = vst [vmem:[#allocation6_spill] sm:$0xff] %v5024_v7  ;;  %v5026_v9 = vpop.f32.mrb[50].mxu1 }
 0x186   :  { %5244 = vst [vmem:[#allocation7_spill] sm:$0xff] %v5026_v9  ;;  %v5028_v13 = vpop.f32.mrb[51].mxu1 }
 0x187   :  { %5245 = vst [vmem:[#allocation8_spill] sm:$0xff] %v5028_v13 }
 0x18b   :  { %v5030_v15 = vpop.f32.mrb[52].mxu1 }
 0x18c   :  { %5246 = vst [vmem:[#allocation9_spill] sm:$0xff] %v5030_v15  ;;  %v5032_v19 = vpop.f32.mrb[53].mxu1 }
 0x18d   :  { %5247 = vst [vmem:[#allocation10_spill] sm:$0xff] %v5032_v19  ;;  %v5034_v21 = vpop.f32.mrb[54].mxu1 }
 0x18e   :  { %5248 = vst [vmem:[#allocation11_spill] sm:$0xff] %v5034_v21  ;;  %v5036_v25 = vpop.f32.mrb[55].mxu1 }
 0x18f   :  { %5249 = vst [vmem:[#allocation12_spill] sm:$0xff] %v5036_v25 }
 0x193   :  { %v5040_v39 = vpop.f32.mrb[56].mxu1 }
 0x194   :  { %5250 = vst [vmem:[#allocation13_spill] sm:$0xff] %v5040_v39  ;;  %v5043_v13 = vpop.f32.mrb[57].mxu1 }
 0x195   :  { %v5046_v15 = vpop.f32.mrb[58].mxu1 }
 0x196   :  { %v5048_v9 = vpop.f32.mrb[59].mxu1 }
 0x199   :  { %v3847_v26 = vpop.f32.mrb[0].mxu0 }
 0x19a   :  { %v3977_v31 = vadd.f32 %v3847_v26, %v4845_v54  ;;  %v2300_v32 = vpop.f32.mrb[1].mxu0 }
 0x19b   :  { %v3978_v37 = vadd.f32 %v2300_v32, %v4850_v56  ;;  %v3848_v38 = vpop.f32.mrb[2].mxu0 }
 0x19c   :  { %v3979_v40 = vadd.f32 %v3848_v38, %v4852_v57  ;;  %v2303_v41 = vpop.f32.mrb[3].mxu0  ;;  %v2621_v21 = vmax.f32 %v3977_v31, 0.0 }
 0x19d   :  { %v3980_v19 = vadd.f32 %v2303_v41, %v4854_v58  ;;  %v2619_v54 = vmax.f32 %v3978_v37, 0.0  ;;  %v5053_v58 = vpop.f32.mrb[60].mxu1 }
 0x19e   :  { %v2622_v25 = vmax.f32 %v3979_v40, 0.0  ;;  %v5057_v37 = vpop.f32.mrb[61].mxu1 }
 0x19f   :  { %v2620_v26 = vmax.f32 %v3980_v19, 0.0 }
 0x1a0   :  { %v2684_v7 = vpack.c.bf16 %v2622_v25, %v2621_v21  ;;  %v5060_v21 = vpop.f32.mrb[62].mxu1 }
 0x1a1   :  { %v2683_v56 = vpack.c.bf16 %v2620_v26, %v2619_v54  ;;  %v3851_v32 = vpop.f32.mrb[4].mxu0  ;;  %v5062_v41 = vpop.f32.mrb[63].mxu1 }
 0x1a2   :  { %v3981_v39 = vadd.f32 %v3851_v32, %v4861_v60  ;;  %v2316_v3 = vpop.f32.mrb[5].mxu0 }
 0x1a3   :  { %v3982_v57 = vadd.f32 %v2316_v3, %v4866_v62  ;;  %v3852_v38 = vpop.f32.mrb[6].mxu0  ;;  %3911 = vmatprep.mubr.msk.bf16.mxu1 %vm327_vm1, %v2683_v56 }
 0x1a4   :  { %v3983_v31 = vadd.f32 %v3852_v38, %v4868_v63  ;;  %v2319_v40 = vpop.f32.mrb[7].mxu0  ;;  %3912 = vmatmul.mubr.msk.bf16.vlgmr.msra.gmra.mrb[64].mxu1 %vm327_vm1, %v2684_v7  ;;  %v2625_v60 = vmax.f32 %v3981_v39, 0.0 }
 0x1a5   :  { %v3984_v19 = vadd.f32 %v2319_v40, %v4870_v0  ;;  %v2623_v62 = vmax.f32 %v3982_v57, 0.0 }
 0x1a6   :  { %v2626_v25 = vmax.f32 %v3983_v31, 0.0 }
 0x1a7   :  { %v2624_v3 = vmax.f32 %v3984_v19, 0.0 }
 0x1a8   :  { %v2686_v54 = vpack.c.bf16 %v2626_v25, %v2625_v60 }
 0x1a9   :  { %v2685_v26 = vpack.c.bf16 %v2624_v3, %v2623_v62  ;;  %v3855_v56 = vpop.f32.mrb[8].mxu0 }
 0x1aa   :  { %v3985_v63 = vadd.f32 %v3855_v56, %v4877_v2  ;;  %v2332_v32 = vpop.f32.mrb[9].mxu0 }
 0x1ab   :  { %v3986_v7 = vadd.f32 %v2332_v32, %v4882_v4  ;;  %v3856_v38 = vpop.f32.mrb[10].mxu0  ;;  %3915 = vmatprep.mubr.msk.bf16.mxu1 %vm327_vm1, %v2685_v26 }
 0x1ac   :  { %v3987_v0 = vadd.f32 %v3856_v38, %v4884_v5  ;;  %v2335_v40 = vpop.f32.mrb[11].mxu0  ;;  %3916 = vmatmul.mubr.msk.bf16.gmra.mrb[68].mxu1 %vm327_vm1, %v2686_v54  ;;  %v2629_v57 = vmax.f32 %v3985_v63, 0.0 }
 0x1ad   :  { %v3988_v39 = vadd.f32 %v2335_v40, %v4886_v6  ;;  %v2627_v19 = vmax.f32 %v3986_v7, 0.0 }
 0x1ae   :  { %v2630_v31 = vmax.f32 %v3987_v0, 0.0 }
 0x1af   :  { %v2628_v60 = vmax.f32 %v3988_v39, 0.0 }
 0x1b0   :  { %v2688_v25 = vpack.c.bf16 %v2630_v31, %v2629_v57 }
 0x1b1   :  { %v2687_v62 = vpack.c.bf16 %v2628_v60, %v2627_v19  ;;  %v3859_v2 = vpop.f32.mrb[12].mxu0 }
 0x1b2   :  { %v3989_v3 = vadd.f32 %v3859_v2, %v4893_v8  ;;  %v2348_v4 = vpop.f32.mrb[13].mxu0 }
 0x1b3   :  { %v3990_v56 = vadd.f32 %v2348_v4, %v4898_v10  ;;  %v3860_v26 = vpop.f32.mrb[14].mxu0  ;;  %3919 = vmatprep.mubr.msk.bf16.mxu1 %vm327_vm1, %v2687_v62 }
 0x1b4   :  { %v3991_v5 = vadd.f32 %v3860_v26, %v4900_v11  ;;  %v2351_v54 = vpop.f32.mrb[15].mxu0  ;;  %3920 = vmatmul.mubr.msk.bf16.gmra.mrb[72].mxu1 %vm327_vm1, %v2688_v25  ;;  %v2633_v63 = vmax.f32 %v3989_v3, 0.0 }
 0x1b5   :  { %v3992_v6 = vadd.f32 %v2351_v54, %v4902_v12  ;;  %v2631_v7 = vmax.f32 %v3990_v56, 0.0 }
 0x1b6   :  { %v2634_v32 = vmax.f32 %v3991_v5, 0.0 }
 0x1b7   :  { %v2632_v38 = vmax.f32 %v3992_v6, 0.0 }
 0x1b8   :  { %v2690_v0 = vpack.c.bf16 %v2634_v32, %v2633_v63 }
 0x1b9   :  { %v2689_v40 = vpack.c.bf16 %v2632_v38, %v2631_v7  ;;  %v3863_v8 = vpop.f32.mrb[16].mxu0 }
 0x1ba   :  { %v3993_v39 = vadd.f32 %v3863_v8, %v4909_v14  ;;  %v2364_v10 = vpop.f32.mrb[17].mxu0 }
 0x1bb   :  { %v3994_v57 = vadd.f32 %v2364_v10, %v4914_v16  ;;  %v3864_v31 = vpop.f32.mrb[18].mxu0  ;;  %3923 = vmatprep.mubr.msk.bf16.mxu1 %vm327_vm1, %v2689_v40 }
 0x1bc   :  { %v3995_v11 = vadd.f32 %v3864_v31, %v4916_v17  ;;  %v2367_v19 = vpop.f32.mrb[19].mxu0  ;;  %3924 = vmatmul.mubr.msk.bf16.gmra.mrb[76].mxu1 %vm327_vm1, %v2690_v0  ;;  %v2637_v60 = vmax.f32 %v3993_v39, 0.0 }
 0x1bd   :  { %v3996_v12 = vadd.f32 %v2367_v19, %v4918_v18  ;;  %v2635_v62 = vmax.f32 %v3994_v57, 0.0 }
 0x1be   :  { %v2638_v25 = vmax.f32 %v3995_v11, 0.0 }
 0x1bf   :  { %v2636_v2 = vmax.f32 %v3996_v12, 0.0 }
 0x1c0   :  { %v2692_v3 = vpack.c.bf16 %v2638_v25, %v2637_v60 }
 0x1c1   :  { %v2691_v4 = vpack.c.bf16 %v2636_v2, %v2635_v62  ;;  %v3867_v14 = vpop.f32.mrb[20].mxu0 }
 0x1c2   :  { %v3997_v56 = vadd.f32 %v3867_v14, %v4925_v20  ;;  %v2380_v16 = vpop.f32.mrb[21].mxu0 }
 0x1c3   :  { %v3998_v26 = vadd.f32 %v2380_v16, %v4930_v22  ;;  %v3868_v5 = vpop.f32.mrb[22].mxu0  ;;  %3927 = vmatprep.mubr.msk.bf16.mxu1 %vm327_vm1, %v2691_v4 }
 0x1c4   :  { %v3999_v17 = vadd.f32 %v3868_v5, %v4932_v23  ;;  %v2383_v54 = vpop.f32.mrb[23].mxu0  ;;  %3928 = vmatmul.mubr.msk.bf16.gmra.mrb[80].mxu1 %vm327_vm1, %v2692_v3  ;;  %v2641_v6 = vmax.f32 %v3997_v56, 0.0 }
 0x1c5   :  { %v4000_v18 = vadd.f32 %v2383_v54, %v4934_v24  ;;  %v2639_v32 = vmax.f32 %v3998_v26, 0.0 }
 0x1c6   :  { %v2642_v63 = vmax.f32 %v3999_v17, 0.0 }
 0x1c7   :  { %v2640_v7 = vmax.f32 %v4000_v18, 0.0 }
 0x1c8   :  { %v2694_v38 = vpack.c.bf16 %v2642_v63, %v2641_v6 }
 0x1c9   :  { %v2693_v0 = vpack.c.bf16 %v2640_v7, %v2639_v32  ;;  %v3871_v20 = vpop.f32.mrb[24].mxu0 }
 0x1ca   :  { %v4001_v40 = vadd.f32 %v3871_v20, %v4944_v27  ;;  %v2396_v22 = vpop.f32.mrb[25].mxu0 }
 0x1cb   :  { %v4002_v8 = vadd.f32 %v2396_v22, %v4946_v28  ;;  %v3872_v39 = vpop.f32.mrb[26].mxu0  ;;  %3931 = vmatprep.mubr.msk.bf16.mxu1 %vm327_vm1, %v2693_v0 }
 0x1cc   :  { %v4003_v23 = vadd.f32 %v3872_v39, %v4948_v29  ;;  %v2399_v10 = vpop.f32.mrb[27].mxu0  ;;  %3932 = vmatmul.mubr.msk.bf16.gmra.mrb[84].mxu1 %vm327_vm1, %v2694_v38  ;;  %v2645_v57 = vmax.f32 %v4001_v40, 0.0 }
 0x1cd   :  { %v4004_v24 = vadd.f32 %v2399_v10, %v4951_v30  ;;  %v2643_v11 = vmax.f32 %v4002_v8, 0.0 }
 0x1ce   :  { %v2646_v31 = vmax.f32 %v4003_v23, 0.0 }
 0x1cf   :  { %v2644_v19 = vmax.f32 %v4004_v24, 0.0 }
 0x1d0   :  { %v2696_v12 = vpack.c.bf16 %v2646_v31, %v2645_v57 }
 0x1d1   :  { %v2695_v60 = vpack.c.bf16 %v2644_v19, %v2643_v11  ;;  %v3875_v27 = vpop.f32.mrb[28].mxu0 }
 0x1d2   :  { %v4005_v25 = vadd.f32 %v3875_v27, %v4960_v33  ;;  %v2412_v28 = vpop.f32.mrb[29].mxu0 }
 0x1d3   :  { %v4006_v62 = vadd.f32 %v2412_v28, %v4962_v34  ;;  %v3876_v2 = vpop.f32.mrb[30].mxu0  ;;  %3935 = vmatprep.mubr.msk.bf16.mxu1 %vm327_vm1, %v2695_v60 }
 0x1d4   :  { %v4007_v29 = vadd.f32 %v3876_v2, %v4964_v35  ;;  %v2415_v3 = vpop.f32.mrb[31].mxu0  ;;  %3936 = vmatmul.mubr.msk.bf16.gmra.mrb[88].mxu1 %vm327_vm1, %v2696_v12  ;;  %v2649_v4 = vmax.f32 %v4005_v25, 0.0 }
 0x1d5   :  { %v4008_v30 = vadd.f32 %v2415_v3, %v4967_v36  ;;  %v2647_v56 = vmax.f32 %v4006_v62, 0.0 }
 0x1d6   :  { %v2650_v14 = vmax.f32 %v4007_v29, 0.0 }
 0x1d7   :  { %v2648_v16 = vmax.f32 %v4008_v30, 0.0 }
 0x1d8   :  { %v2698_v26 = vpack.c.bf16 %v2650_v14, %v2649_v4 }
 0x1d9   :  { %v2697_v5 = vpack.c.bf16 %v2648_v16, %v2647_v56  ;;  %v3879_v33 = vpop.f32.mrb[32].mxu0 }
 0x1da   :  { %v4009_v17 = vadd.f32 %v3879_v33, %v4990_v42  ;;  %v2428_v34 = vpop.f32.mrb[33].mxu0 }
 0x1db   :  { %v4010_v54 = vadd.f32 %v2428_v34, %v4992_v43  ;;  %v3880_v18 = vpop.f32.mrb[34].mxu0  ;;  %3939 = vmatprep.mubr.msk.bf16.mxu1 %vm327_vm1, %v2697_v5 }
 0x1dc   :  { %v4011_v35 = vadd.f32 %v3880_v18, %v4994_v44  ;;  %v2431_v6 = vpop.f32.mrb[35].mxu0  ;;  %3940 = vmatmul.mubr.msk.bf16.gmra.mrb[92].mxu1 %vm327_vm1, %v2698_v26  ;;  %v2653_v63 = vmax.f32 %v4009_v17, 0.0 }
 0x1dd   :  { %v4012_v36 = vadd.f32 %v2431_v6, %v4996_v45  ;;  %v2651_v7 = vmax.f32 %v4010_v54, 0.0  ;;  %v5251_v54 = vld [vmem:[#allocation5_spill] sm:$0xff] }
 0x1de   :  { %v2654_v32 = vmax.f32 %v4011_v35, 0.0  ;;  %v5252_v35 = vld [vmem:[#allocation6_spill] sm:$0xff] }
 0x1df   :  { %v2652_v38 = vmax.f32 %v4012_v36, 0.0 }
 0x1e0   :  { %v2700_v0 = vpack.c.bf16 %v2654_v32, %v2653_v63 }
 0x1e1   :  { %v2699_v20 = vpack.c.bf16 %v2652_v38, %v2651_v7  ;;  %v3883_v42 = vpop.f32.mrb[36].mxu0 }
 0x1e2   :  { %v4013_v40 = vadd.f32 %v3883_v42, %v4998_v46  ;;  %v2444_v43 = vpop.f32.mrb[37].mxu0 }
 0x1e3   :  { %v4014_v22 = vadd.f32 %v2444_v43, %v5000_v47  ;;  %v3884_v8 = vpop.f32.mrb[38].mxu0  ;;  %3943 = vmatprep.mubr.msk.bf16.mxu1 %vm327_vm1, %v2699_v20 }
 0x1e4   :  { %v4015_v44 = vadd.f32 %v3884_v8, %v5002_v48  ;;  %v2447_v39 = vpop.f32.mrb[39].mxu0  ;;  %3944 = vmatmul.mubr.msk.bf16.gmra.mrb[96].mxu1 %vm327_vm1, %v2700_v0  ;;  %v2657_v23 = vmax.f32 %v4013_v40, 0.0  ;;  %v5255_v8 = vld [vmem:[#allocation9_spill] sm:$0xff] }
 0x1e5   :  { %v4016_v45 = vadd.f32 %v2447_v39, %v5004_v49  ;;  %v2655_v24 = vmax.f32 %v4014_v22, 0.0 }
 0x1e6   :  { %v2658_v10 = vmax.f32 %v4015_v44, 0.0 }
 0x1e7   :  { %v2656_v57 = vmax.f32 %v4016_v45, 0.0  ;;  %v5256_v45 = vld [vmem:[#allocation10_spill] sm:$0xff] }
 0x1e8   :  { %v2702_v31 = vpack.c.bf16 %v2658_v10, %v2657_v23 }
 0x1e9   :  { %v2701_v11 = vpack.c.bf16 %v2656_v57, %v2655_v24  ;;  %v3887_v46 = vpop.f32.mrb[40].mxu0  ;;  %v5257_v24 = vld [vmem:[#allocation11_spill] sm:$0xff] }
 0x1ea   :  { %v4017_v19 = vadd.f32 %v3887_v46, %v5006_v50  ;;  %v2460_v47 = vpop.f32.mrb[41].mxu0 }
 0x1eb   :  { %v4018_v12 = vadd.f32 %v2460_v47, %v5008_v51  ;;  %v3888_v60 = vpop.f32.mrb[42].mxu0  ;;  %3947 = vmatprep.mubr.msk.bf16.mxu1 %vm327_vm1, %v2701_v11  ;;  %v5258_v11 = vld [vmem:[#allocation12_spill] sm:$0xff] }
 0x1ec   :  { %v4019_v48 = vadd.f32 %v3888_v60, %v5010_v52  ;;  %v2463_v27 = vpop.f32.mrb[43].mxu0  ;;  %3948 = vmatmul.mubr.msk.bf16.gmra.mrb[100].mxu1 %vm327_vm1, %v2702_v31  ;;  %v2661_v25 = vmax.f32 %v4017_v19, 0.0 }
 0x1ed   :  { %v4020_v49 = vadd.f32 %v2463_v27, %v5012_v53  ;;  %v2659_v62 = vmax.f32 %v4018_v12, 0.0 }
 0x1ee   :  { %v2662_v28 = vmax.f32 %v4019_v48, 0.0 }
 0x1ef   :  { %v2660_v2 = vmax.f32 %v4020_v49, 0.0 }
 0x1f0   :  { %v2704_v29 = vpack.c.bf16 %v2662_v28, %v2661_v25  ;;  %v5259_v25 = vld [vmem:[#allocation13_spill] sm:$0xff] }
 0x1f1   :  { %v2703_v3 = vpack.c.bf16 %v2660_v2, %v2659_v62  ;;  %v3891_v50 = vpop.f32.mrb[44].mxu0 }
 0x1f2   :  { %v4021_v30 = vadd.f32 %v3891_v50, %v5014_v55  ;;  %v2476_v51 = vpop.f32.mrb[45].mxu0 }
 0x1f3   :  { %v4022_v4 = vadd.f32 %v2476_v51, %v5016_v59  ;;  %v3892_v14 = vpop.f32.mrb[46].mxu0  ;;  %3951 = vmatprep.mubr.msk.bf16.mxu1 %vm327_vm1, %v2703_v3 }
 0x1f4   :  { %v4023_v52 = vadd.f32 %v3892_v14, %v5018_v61  ;;  %v2479_v56 = vpop.f32.mrb[47].mxu0  ;;  %3952 = vmatmul.mubr.msk.bf16.gmra.mrb[104].mxu1 %vm327_vm1, %v2704_v29  ;;  %v2665_v16 = vmax.f32 %v4021_v30, 0.0  ;;  %v5253_v61 = vld [vmem:[#allocation7_spill] sm:$0xff] }
 0x1f5   :  { %v4024_v53 = vadd.f32 %v2479_v56, %v5020_v1  ;;  %v2663_v5 = vmax.f32 %v4022_v4, 0.0  ;;  %v5254_v1 = vld [vmem:[#allocation8_spill] sm:$0xff] }
 0x1f6   :  { %v2666_v26 = vmax.f32 %v4023_v52, 0.0 }
 0x1f7   :  { %v2664_v33 = vmax.f32 %v4024_v53, 0.0 }
 0x1f8   :  { %v2706_v17 = vpack.c.bf16 %v2666_v26, %v2665_v16 }
 0x1f9   :  { %v2705_v34 = vpack.c.bf16 %v2664_v33, %v2663_v5  ;;  %v3895_v55 = vpop.f32.mrb[48].mxu0 }
 0x1fa   :  { %v4025_v18 = vadd.f32 %v3895_v55, %v5251_v54  ;;  %v2492_v59 = vpop.f32.mrb[49].mxu0 }
 0x1fb   :  { %v4026_v6 = vadd.f32 %v2492_v59, %v5252_v35  ;;  %v3896_v36 = vpop.f32.mrb[50].mxu0  ;;  %3955 = vmatprep.mubr.msk.bf16.mxu1 %vm327_vm1, %v2705_v34 }
 0x1fc   :  { %v4027_v63 = vadd.f32 %v3896_v36, %v5253_v61  ;;  %v2495_v32 = vpop.f32.mrb[51].mxu0  ;;  %3956 = vmatmul.mubr.msk.bf16.gmra.mrb[108].mxu1 %vm327_vm1, %v2706_v17  ;;  %v2669_v38 = vmax.f32 %v4025_v18, 0.0 }
 0x1fd   :  { %v4028_v7 = vadd.f32 %v2495_v32, %v5254_v1  ;;  %v2667_v20 = vmax.f32 %v4026_v6, 0.0 }
 0x1fe   :  { %v2670_v0 = vmax.f32 %v4027_v63, 0.0 }
 0x1ff   :  { %v2668_v42 = vmax.f32 %v4028_v7, 0.0 }
 0x200   :  { %v2708_v40 = vpack.c.bf16 %v2670_v0, %v2669_v38 }
 0x201   :  { %v2707_v43 = vpack.c.bf16 %v2668_v42, %v2667_v20  ;;  %v3899_v22 = vpop.f32.mrb[52].mxu0 }
 0x202   :  { %v4029_v44 = vadd.f32 %v3899_v22, %v5255_v8  ;;  %v2508_v39 = vpop.f32.mrb[53].mxu0 }
 0x203   :  { %v4030_v23 = vadd.f32 %v2508_v39, %v5256_v45  ;;  %v3900_v10 = vpop.f32.mrb[54].mxu0  ;;  %3959 = vmatprep.mubr.msk.bf16.mxu1 %vm327_vm1, %v2707_v43 }
 0x204   :  { %v4031_v57 = vadd.f32 %v3900_v10, %v5257_v24  ;;  %v2511_v31 = vpop.f32.mrb[55].mxu0  ;;  %3960 = vmatmul.mubr.msk.bf16.gmra.mrb[112].mxu1 %vm327_vm1, %v2708_v40  ;;  %v2673_v19 = vmax.f32 %v4029_v44, 0.0 }
 0x205   :  { %v4032_v46 = vadd.f32 %v2511_v31, %v5258_v11  ;;  %v2671_v12 = vmax.f32 %v4030_v23, 0.0 }
 0x206   :  { %v2674_v47 = vmax.f32 %v4031_v57, 0.0 }
 0x207   :  { %v2672_v60 = vmax.f32 %v4032_v46, 0.0 }
 0x208   :  { %v2710_v48 = vpack.c.bf16 %v2674_v47, %v2673_v19 }
 0x209   :  { %v2709_v27 = vpack.c.bf16 %v2672_v60, %v2671_v12  ;;  %v3903_v49 = vpop.f32.mrb[56].mxu0 }
 0x20a   :  { %v4033_v28 = vadd.f32 %v3903_v49, %v5259_v25  ;;  %v2524_v62 = vpop.f32.mrb[57].mxu0 }
 0x20b   :  { %v4034_v2 = vadd.f32 %v2524_v62, %v5043_v13  ;;  %v3904_v29 = vpop.f32.mrb[58].mxu0  ;;  %3963 = vmatprep.mubr.msk.bf16.mxu1 %vm327_vm1, %v2709_v27 }
 0x20c   :  { %v4035_v3 = vadd.f32 %v3904_v29, %v5046_v15  ;;  %v2527_v50 = vpop.f32.mrb[59].mxu0  ;;  %3964 = vmatmul.mubr.msk.bf16.gmra.mrb[116].mxu1 %vm327_vm1, %v2710_v48  ;;  %v2677_v51 = vmax.f32 %v4033_v28, 0.0 }
 0x20d   :  { %v4036_v30 = vadd.f32 %v2527_v50, %v5048_v9  ;;  %v2675_v14 = vmax.f32 %v4034_v2, 0.0 }
 0x20e   :  { %v2678_v4 = vmax.f32 %v4035_v3, 0.0 }
 0x20f   :  { %v2676_v52 = vmax.f32 %v4036_v30, 0.0 }
 0x210   :  { %v2712_v56 = vpack.c.bf16 %v2678_v4, %v2677_v51 }
 0x211   :  { %v2711_v53 = vpack.c.bf16 %v2676_v52, %v2675_v14  ;;  %v3907_v16 = vpop.f32.mrb[60].mxu0 }
 0x212   :  { %v4037_v26 = vadd.f32 %v3907_v16, %v5053_v58  ;;  %v2540_v13 = vpop.f32.mrb[61].mxu0  ;;  %v5153_v58 = vld [vmem:[%s5240_s9] ss:$0 sm:$0xff]  ;;  %s4330_s9 = smov [#allocation2]  }
 0x213   :  { %v4038_v5 = vadd.f32 %v2540_v13, %v5057_v37  ;;  %v3908_v33 = vpop.f32.mrb[62].mxu0  ;;  %3967 = vmatprep.mubr.msk.bf16.mxu1 %vm327_vm1, %v2711_v53  ;;  %s3180_s25 = sshll.u32 %s4330_s9, 4  ;;  %s3181_s25 = int_to_ptr.vmem [resolvable:$true] %s3180_s25 }
 0x214   :  { %v4039_v15 = vadd.f32 %v3908_v33, %v5060_v21  ;;  %v2543_v17 = vpop.f32.mrb[63].mxu0  ;;  %3968 = vmatmul.mubr.msk.bf16.gmra.mrb[120].mxu1 %vm327_vm1, %v2712_v56  ;;  %v2681_v34 = vmax.f32 %v4037_v26, 0.0  ;;  %s4306_s26 = scalar_lea.vmem %s3181_s25, 8192  ;;  %p4311_p1 = scmp.lt.s32.totalorder %s3181_s25, %s3181_s25 }
 0x215   :  { %v4040_v9 = vadd.f32 %v2543_v17, %v5062_v41  ;;  %v2679_v54 = vmax.f32 %v4038_v5, 0.0  ;;  %p4307_p0 = scmp.ne.s32.totalorder %s3181_s25, %s4306_s26  ;;  %p4312_p2 = scmp.lt.s32.totalorder %s4306_s26, %s4306_s26 }
 0x216   :  { %v2682_v55 = vmax.f32 %v4039_v15, 0.0 }
 0x217   :  { %v2680_v18 = vmax.f32 %v4040_v9, 0.0  ;;  %p4313_p3 = por %p4312_p2, %p4311_p1 }
 0x218   :  { %v2714_v59 = vpack.c.bf16 %v2682_v55, %v2681_v34 }
 0x219   :  { %v2713_v35 = vpack.c.bf16 %v2680_v18, %v2679_v54  ;;  %p4314_p4 = pnand %p4313_p3, %p4307_p0 }
 0x21b   :  { %3971 = vmatprep.mubr.msk.bf16.mxu1 %vm327_vm1, %v2713_v35 }
 0x21c   :  { %3972 = vmatmul.mubr.msk.bf16.gmra.mrb[124].mxu1 %vm327_vm1, %v2714_v59 }
 0x277   :  { %v3913_v37 = vpop.f32.mrb[64].mxu1 }
 0x278   :  { %v2865_v21 = vadd.f32 %v3913_v37, %v5153_v58  ;;  %v2856_v6 = vpop.f32.mrb[65].mxu1 }
 0x279   :  { %v2857_v41 = vadd.f32 %v5153_v58, %v2856_v6  ;;  %v3914_v36 = vpop.f32.mrb[66].mxu1 }
 0x27a   :  { %3113 = vst [vmem:[#allocation2 + $0x10] sm:$0xff] %v2865_v21  ;;  %v2868_v61 = vadd.f32 %v3914_v36, %v5153_v58  ;;  %v2859_v63 = vpop.f32.mrb[67].mxu1 }
 0x27b   :  { %3111 = vst [vmem:[#allocation2] sm:$0xff] %v2857_v41  ;;  %v2860_v32 = vadd.f32 %v5153_v58, %v2859_v63 }
 0x27c   :  { %3114 = vst [vmem:[#allocation2 + $0x18] sm:$0xff] %v2868_v61 }
 0x27d   :  { %3112 = vst [vmem:[#allocation2 + $0x8] sm:$0xff] %v2860_v32 }
 0x27f   :  { %v3917_v1 = vpop.f32.mrb[68].mxu1 }
 0x280   :  { %v2881_v7 = vadd.f32 %v3917_v1, %v5153_v58  ;;  %v2872_v38 = vpop.f32.mrb[69].mxu1 }
 0x281   :  { %v2873_v0 = vadd.f32 %v5153_v58, %v2872_v38  ;;  %v3918_v20 = vpop.f32.mrb[70].mxu1 }
 0x282   :  { %3117 = vst [vmem:[#allocation2 + $0x30] sm:$0xff] %v2881_v7  ;;  %v2884_v42 = vadd.f32 %v3918_v20, %v5153_v58  ;;  %v2875_v40 = vpop.f32.mrb[71].mxu1 }
 0x283   :  { %3115 = vst [vmem:[#allocation2 + $0x20] sm:$0xff] %v2873_v0  ;;  %v2876_v43 = vadd.f32 %v5153_v58, %v2875_v40 }
 0x284   :  { %3118 = vst [vmem:[#allocation2 + $0x38] sm:$0xff] %v2884_v42 }
 0x285   :  { %3116 = vst [vmem:[#allocation2 + $0x28] sm:$0xff] %v2876_v43 }
 0x287   :  { %v3921_v22 = vpop.f32.mrb[72].mxu1 }
 0x288   :  { %v2897_v8 = vadd.f32 %v3921_v22, %v5153_v58  ;;  %v2888_v44 = vpop.f32.mrb[73].mxu1 }
 0x289   :  { %v2889_v39 = vadd.f32 %v5153_v58, %v2888_v44  ;;  %v3922_v45 = vpop.f32.mrb[74].mxu1 }
 0x28a   :  { %3121 = vst [vmem:[#allocation2 + $0x50] sm:$0xff] %v2897_v8  ;;  %v2900_v23 = vadd.f32 %v3922_v45, %v5153_v58  ;;  %v2891_v10 = vpop.f32.mrb[75].mxu1 }
 0x28b   :  { %3119 = vst [vmem:[#allocation2 + $0x40] sm:$0xff] %v2889_v39  ;;  %v2892_v24 = vadd.f32 %v5153_v58, %v2891_v10 }
 0x28c   :  { %3122 = vst [vmem:[#allocation2 + $0x58] sm:$0xff] %v2900_v23 }
 0x28d   :  { %3120 = vst [vmem:[#allocation2 + $0x48] sm:$0xff] %v2892_v24 }
 0x28f   :  { %v3925_v57 = vpop.f32.mrb[76].mxu1 }
 0x290   :  { %v2913_v31 = vadd.f32 %v3925_v57, %v5153_v58  ;;  %v2904_v11 = vpop.f32.mrb[77].mxu1 }
 0x291   :  { %v2905_v46 = vadd.f32 %v5153_v58, %v2904_v11  ;;  %v3926_v19 = vpop.f32.mrb[78].mxu1 }
 0x292   :  { %3125 = vst [vmem:[#allocation2 + $0x70] sm:$0xff] %v2913_v31  ;;  %v2916_v47 = vadd.f32 %v3926_v19, %v5153_v58  ;;  %v2907_v12 = vpop.f32.mrb[79].mxu1 }
 0x293   :  { %3123 = vst [vmem:[#allocation2 + $0x60] sm:$0xff] %v2905_v46  ;;  %v2908_v60 = vadd.f32 %v5153_v58, %v2907_v12 }
 0x294   :  { %3126 = vst [vmem:[#allocation2 + $0x78] sm:$0xff] %v2916_v47 }
 0x295   :  { %3124 = vst [vmem:[#allocation2 + $0x68] sm:$0xff] %v2908_v60 }
 0x297   :  { %v3929_v48 = vpop.f32.mrb[80].mxu1 }
 0x298   :  { %v2929_v27 = vadd.f32 %v3929_v48, %v5153_v58  ;;  %v2920_v49 = vpop.f32.mrb[81].mxu1 }
 0x299   :  { %v2921_v25 = vadd.f32 %v5153_v58, %v2920_v49  ;;  %v3930_v28 = vpop.f32.mrb[82].mxu1 }
 0x29a   :  { %3129 = vst [vmem:[#allocation2 + $0x90] sm:$0xff] %v2929_v27  ;;  %v2932_v62 = vadd.f32 %v3930_v28, %v5153_v58  ;;  %v2923_v2 = vpop.f32.mrb[83].mxu1 }
 0x29b   :  { %3127 = vst [vmem:[#allocation2 + $0x80] sm:$0xff] %v2921_v25  ;;  %v2924_v29 = vadd.f32 %v5153_v58, %v2923_v2 }
 0x29c   :  { %3130 = vst [vmem:[#allocation2 + $0x98] sm:$0xff] %v2932_v62 }
 0x29d   :  { %3128 = vst [vmem:[#allocation2 + $0x88] sm:$0xff] %v2924_v29 }
 0x29f   :  { %v3933_v3 = vpop.f32.mrb[84].mxu1 }
 0x2a0   :  { %v2945_v50 = vadd.f32 %v3933_v3, %v5153_v58  ;;  %v2936_v30 = vpop.f32.mrb[85].mxu1 }
 0x2a1   :  { %v2937_v51 = vadd.f32 %v5153_v58, %v2936_v30  ;;  %v3934_v4 = vpop.f32.mrb[86].mxu1 }
 0x2a2   :  { %3133 = vst [vmem:[#allocation2 + $0xb0] sm:$0xff] %v2945_v50  ;;  %v2948_v14 = vadd.f32 %v3934_v4, %v5153_v58  ;;  %v2939_v52 = vpop.f32.mrb[87].mxu1 }
 0x2a3   :  { %3131 = vst [vmem:[#allocation2 + $0xa0] sm:$0xff] %v2937_v51  ;;  %v2940_v56 = vadd.f32 %v5153_v58, %v2939_v52 }
 0x2a4   :  { %3134 = vst [vmem:[#allocation2 + $0xb8] sm:$0xff] %v2948_v14 }
 0x2a5   :  { %3132 = vst [vmem:[#allocation2 + $0xa8] sm:$0xff] %v2940_v56 }
 0x2a7   :  { %v3937_v53 = vpop.f32.mrb[88].mxu1 }
 0x2a8   :  { %v2961_v16 = vadd.f32 %v3937_v53, %v5153_v58  ;;  %v2952_v26 = vpop.f32.mrb[89].mxu1 }
 0x2a9   :  { %v2953_v13 = vadd.f32 %v5153_v58, %v2952_v26  ;;  %v3938_v5 = vpop.f32.mrb[90].mxu1 }
 0x2aa   :  { %3137 = vst [vmem:[#allocation2 + $0xd0] sm:$0xff] %v2961_v16  ;;  %v2964_v33 = vadd.f32 %v3938_v5, %v5153_v58  ;;  %v2955_v15 = vpop.f32.mrb[91].mxu1 }
 0x2ab   :  { %3135 = vst [vmem:[#allocation2 + $0xc0] sm:$0xff] %v2953_v13  ;;  %v2956_v17 = vadd.f32 %v5153_v58, %v2955_v15 }
 0x2ac   :  { %3138 = vst [vmem:[#allocation2 + $0xd8] sm:$0xff] %v2964_v33 }
 0x2ad   :  { %3136 = vst [vmem:[#allocation2 + $0xc8] sm:$0xff] %v2956_v17 }
 0x2af   :  { %v3941_v9 = vpop.f32.mrb[92].mxu1 }
 0x2b0   :  { %v2977_v34 = vadd.f32 %v3941_v9, %v5153_v58  ;;  %v2968_v55 = vpop.f32.mrb[93].mxu1 }
 0x2b1   :  { %v2969_v54 = vadd.f32 %v5153_v58, %v2968_v55  ;;  %v3942_v18 = vpop.f32.mrb[94].mxu1 }
 0x2b2   :  { %3141 = vst [vmem:[#allocation2 + $0xf0] sm:$0xff] %v2977_v34  ;;  %v2980_v59 = vadd.f32 %v3942_v18, %v5153_v58  ;;  %v2971_v35 = vpop.f32.mrb[95].mxu1 }
 0x2b3   :  { %3139 = vst [vmem:[#allocation2 + $0xe0] sm:$0xff] %v2969_v54  ;;  %v2972_v37 = vadd.f32 %v5153_v58, %v2971_v35 }
 0x2b4   :  { %3142 = vst [vmem:[#allocation2 + $0xf8] sm:$0xff] %v2980_v59 }
 0x2b5   :  { %3140 = vst [vmem:[#allocation2 + $0xe8] sm:$0xff] %v2972_v37 }
 0x2b7   :  { %v3945_v21 = vpop.f32.mrb[96].mxu1 }
 0x2b8   :  { %v2993_v6 = vadd.f32 %v3945_v21, %v5153_v58  ;;  %v2984_v41 = vpop.f32.mrb[97].mxu1 }
 0x2b9   :  { %v2985_v36 = vadd.f32 %v5153_v58, %v2984_v41  ;;  %v3946_v61 = vpop.f32.mrb[98].mxu1 }
 0x2ba   :  { %3145 = vst [vmem:[#allocation2 + $0x110] sm:$0xff] %v2993_v6  ;;  %v2996_v63 = vadd.f32 %v3946_v61, %v5153_v58  ;;  %v2987_v32 = vpop.f32.mrb[99].mxu1 }
 0x2bb   :  { %3143 = vst [vmem:[#allocation2 + $0x100] sm:$0xff] %v2985_v36  ;;  %v2988_v1 = vadd.f32 %v5153_v58, %v2987_v32 }
 0x2bc   :  { %3146 = vst [vmem:[#allocation2 + $0x118] sm:$0xff] %v2996_v63 }
 0x2bd   :  { %3144 = vst [vmem:[#allocation2 + $0x108] sm:$0xff] %v2988_v1 }
 0x2bf   :  { %v3949_v7 = vpop.f32.mrb[100].mxu1 }
 0x2c0   :  { %v3009_v38 = vadd.f32 %v3949_v7, %v5153_v58  ;;  %v3000_v0 = vpop.f32.mrb[101].mxu1 }
 0x2c1   :  { %v3001_v20 = vadd.f32 %v5153_v58, %v3000_v0  ;;  %v3950_v42 = vpop.f32.mrb[102].mxu1 }
 0x2c2   :  { %3149 = vst [vmem:[#allocation2 + $0x130] sm:$0xff] %v3009_v38  ;;  %v3012_v40 = vadd.f32 %v3950_v42, %v5153_v58  ;;  %v3003_v43 = vpop.f32.mrb[103].mxu1 }
 0x2c3   :  { %3147 = vst [vmem:[#allocation2 + $0x120] sm:$0xff] %v3001_v20  ;;  %v3004_v22 = vadd.f32 %v5153_v58, %v3003_v43 }
 0x2c4   :  { %3150 = vst [vmem:[#allocation2 + $0x138] sm:$0xff] %v3012_v40 }
 0x2c5   :  { %3148 = vst [vmem:[#allocation2 + $0x128] sm:$0xff] %v3004_v22 }
 0x2c7   :  { %v3953_v8 = vpop.f32.mrb[104].mxu1 }
 0x2c8   :  { %v3025_v44 = vadd.f32 %v3953_v8, %v5153_v58  ;;  %v3016_v39 = vpop.f32.mrb[105].mxu1 }
 0x2c9   :  { %v3017_v45 = vadd.f32 %v5153_v58, %v3016_v39  ;;  %v3954_v23 = vpop.f32.mrb[106].mxu1 }
 0x2ca   :  { %3153 = vst [vmem:[#allocation2 + $0x150] sm:$0xff] %v3025_v44  ;;  %v3028_v10 = vadd.f32 %v3954_v23, %v5153_v58  ;;  %v3019_v24 = vpop.f32.mrb[107].mxu1 }
 0x2cb   :  { %3151 = vst [vmem:[#allocation2 + $0x140] sm:$0xff] %v3017_v45  ;;  %v3020_v57 = vadd.f32 %v5153_v58, %v3019_v24 }
 0x2cc   :  { %3154 = vst [vmem:[#allocation2 + $0x158] sm:$0xff] %v3028_v10 }
 0x2cd   :  { %3152 = vst [vmem:[#allocation2 + $0x148] sm:$0xff] %v3020_v57 }
 0x2cf   :  { %v3957_v31 = vpop.f32.mrb[108].mxu1 }
 0x2d0   :  { %v3041_v11 = vadd.f32 %v3957_v31, %v5153_v58  ;;  %v3032_v46 = vpop.f32.mrb[109].mxu1 }
 0x2d1   :  { %v3033_v19 = vadd.f32 %v5153_v58, %v3032_v46  ;;  %v3958_v47 = vpop.f32.mrb[110].mxu1 }
 0x2d2   :  { %3157 = vst [vmem:[#allocation2 + $0x170] sm:$0xff] %v3041_v11  ;;  %v3044_v12 = vadd.f32 %v3958_v47, %v5153_v58  ;;  %v3035_v60 = vpop.f32.mrb[111].mxu1 }
 0x2d3   :  { %3155 = vst [vmem:[#allocation2 + $0x160] sm:$0xff] %v3033_v19  ;;  %v3036_v48 = vadd.f32 %v5153_v58, %v3035_v60 }
 0x2d4   :  { %3158 = vst [vmem:[#allocation2 + $0x178] sm:$0xff] %v3044_v12 }
 0x2d5   :  { %3156 = vst [vmem:[#allocation2 + $0x168] sm:$0xff] %v3036_v48 }
 0x2d7   :  { %v3961_v27 = vpop.f32.mrb[112].mxu1 }
 0x2d8   :  { %v3057_v49 = vadd.f32 %v3961_v27, %v5153_v58  ;;  %v3048_v25 = vpop.f32.mrb[113].mxu1 }
 0x2d9   :  { %v3049_v28 = vadd.f32 %v5153_v58, %v3048_v25  ;;  %v3962_v62 = vpop.f32.mrb[114].mxu1 }
 0x2da   :  { %3161 = vst [vmem:[#allocation2 + $0x190] sm:$0xff] %v3057_v49  ;;  %v3060_v2 = vadd.f32 %v3962_v62, %v5153_v58  ;;  %v3051_v29 = vpop.f32.mrb[115].mxu1 }
 0x2db   :  { %3159 = vst [vmem:[#allocation2 + $0x180] sm:$0xff] %v3049_v28  ;;  %v3052_v3 = vadd.f32 %v5153_v58, %v3051_v29 }
 0x2dc   :  { %3162 = vst [vmem:[#allocation2 + $0x198] sm:$0xff] %v3060_v2 }
 0x2dd   :  { %3160 = vst [vmem:[#allocation2 + $0x188] sm:$0xff] %v3052_v3 }
 0x2df   :  { %v3965_v50 = vpop.f32.mrb[116].mxu1 }
 0x2e0   :  { %v3073_v30 = vadd.f32 %v3965_v50, %v5153_v58  ;;  %v3064_v51 = vpop.f32.mrb[117].mxu1 }
 0x2e1   :  { %v3065_v4 = vadd.f32 %v5153_v58, %v3064_v51  ;;  %v3966_v14 = vpop.f32.mrb[118].mxu1 }
 0x2e2   :  { %3165 = vst [vmem:[#allocation2 + $0x1b0] sm:$0xff] %v3073_v30  ;;  %v3076_v52 = vadd.f32 %v3966_v14, %v5153_v58  ;;  %v3067_v56 = vpop.f32.mrb[119].mxu1 }
 0x2e3   :  { %3163 = vst [vmem:[#allocation2 + $0x1a0] sm:$0xff] %v3065_v4  ;;  %v3068_v53 = vadd.f32 %v5153_v58, %v3067_v56 }
 0x2e4   :  { %3166 = vst [vmem:[#allocation2 + $0x1b8] sm:$0xff] %v3076_v52 }
 0x2e5   :  { %3164 = vst [vmem:[#allocation2 + $0x1a8] sm:$0xff] %v3068_v53 }
 0x2e7   :  { %v3969_v16 = vpop.f32.mrb[120].mxu1 }
 0x2e8   :  { %v3089_v26 = vadd.f32 %v3969_v16, %v5153_v58  ;;  %v3080_v13 = vpop.f32.mrb[121].mxu1 }
 0x2e9   :  { %v3081_v5 = vadd.f32 %v5153_v58, %v3080_v13  ;;  %v3970_v33 = vpop.f32.mrb[122].mxu1 }
 0x2ea   :  { %3169 = vst [vmem:[#allocation2 + $0x1d0] sm:$0xff] %v3089_v26  ;;  %v3092_v15 = vadd.f32 %v3970_v33, %v5153_v58  ;;  %v3083_v17 = vpop.f32.mrb[123].mxu1 }
 0x2eb   :  { %3167 = vst [vmem:[#allocation2 + $0x1c0] sm:$0xff] %v3081_v5  ;;  %v3084_v9 = vadd.f32 %v5153_v58, %v3083_v17 }
 0x2ec   :  { %3170 = vst [vmem:[#allocation2 + $0x1d8] sm:$0xff] %v3092_v15 }
 0x2ed   :  { %3168 = vst [vmem:[#allocation2 + $0x1c8] sm:$0xff] %v3084_v9 }
 0x2ef   :  { %v3973_v34 = vpop.f32.mrb[124].mxu1 }
 0x2f0   :  { %v3105_v55 = vadd.f32 %v3973_v34, %v5153_v58  ;;  %v3096_v54 = vpop.f32.mrb[125].mxu1 }
 0x2f1   :  { %v3097_v18 = vadd.f32 %v5153_v58, %v3096_v54  ;;  %v3974_v59 = vpop.f32.mrb[126].mxu1 }
 0x2f2   :  { %3173 = vst [vmem:[#allocation2 + $0x1f0] sm:$0xff] %v3105_v55  ;;  %v3108_v35 = vadd.f32 %v3974_v59, %v5153_v58  ;;  %v3099_v37 = vpop.f32.mrb[127].mxu1 }
 0x2f3   :  { %3171 = vst [vmem:[#allocation2 + $0x1e0] sm:$0xff] %v3097_v18  ;;  %v3100_v21 = vadd.f32 %v5153_v58, %v3099_v37 }
 0x2f4   :  { %3174 = vst [vmem:[#allocation2 + $0x1f8] sm:$0xff] %v3108_v35 }
 0x2f5   :  { %3172 = vst [vmem:[#allocation2 + $0x1e8] sm:$0xff] %v3100_v21 }
 0x2f6   :  { %4317 = shalt.err (!%p4314_p4)
}
 0x2f7   :  { %s4318_s29 = scalar_lea.hbm %s5241_s10, 8192 }
 0x2f8   :  { %p4319_p5 = scmp.ne.s32.totalorder %s5241_s10, %s4318_s29  ;;  %p4322_p6 = scmp.lt.u32.totalorder %s4318_s29, %s5241_s10 }
 0x2fa   :  { %p4324_p7 = pnand %p4322_p6, %p4319_p5 }
 0x2fc   :  { %4327 = shalt.err (!%p4324_p7)
}
 0x2fd   :  { %s4331_s13 = smov 128   ;;  %s4332_s14 = smov 8  }
 0x2fe   :  { %3186 = dma.vmem_to_hbm [thread:$0]  %s3181_s25, 8192, %s5241_s10, [#allocation3], %s4331_s13, %s4331_s13, %s4332_s14  }
 0x2ff   :  { %4328 = dma.done.wait [#allocation3], 8192  }
 0x300   :  { %4329 = vsyncadd [#allocation3], 4294959104 }
 0x301   :  { %3190 = vsyncpa [#allocation3], 1 }

</bundles_post_ra>
